<compile_context>
chip_gen: v7x
topology: tpu7x:2x2x1
jax: 0.10.0
libtpu: 0.0.40
codegen_flags: <defaults>
</compile_context>

<pallas_src>
import functools

import jax
import jax.numpy as jnp
from jax.experimental import pallas as pl
from jax.experimental.pallas import tpu as pltpu


# -----------------------------------------------------------------------------
# Kernel
# -----------------------------------------------------------------------------
def _mish(x):
    # mish(x) = x * tanh(softplus(x)) = x * u / (u + 2),  u = e^x (e^x + 2)
    # clamp the exp argument: for x > 20 the ratio is 1.0 in f32 anyway.
    t = jnp.exp(jnp.minimum(x, 20.0))
    u = t * (t + 2.0)
    return x * u * pl.reciprocal(u + 2.0, approx=True)


def _fused_kernel(z_ref, s64_ref, s128_ref, xp_ref, t1ts_ref, t2_ref,
                  o_ref, h1p_ref, *, B, H, Hp, W, k, zd, r1, r2):
    pad = (k - 1) // 2
    N = o_ref.shape[-1]            # W * Cout  (lane-dense, 128)
    K1 = xp_ref.shape[-1]          # W * Cin

    # ---- style scales: pre-tiled by the wrapper, so they come out lane-dense --------------
    z = z_ref[...]                                                                  # (B, zd)
    s1 = jnp.dot(z, s64_ref[0:zd, :], preferred_element_type=jnp.float32) \
        + s64_ref[zd:zd + 1, :]                                                     # (B, K1)
    d1 = jax.lax.rsqrt(jnp.dot(s1 * s1, s128_ref[r1:r1 + K1, :],
                               preferred_element_type=jnp.float32) + 1e-8)          # (B, N)
    s2 = jnp.dot(z, s128_ref[0:zd, :], preferred_element_type=jnp.float32) \
        + s128_ref[zd:zd + 1, :]                                                    # (B, N)
    d2 = jax.lax.rsqrt(jnp.dot(s2 * s2, s128_ref[r2:r2 + N, :],
                               preferred_element_type=jnp.float32) + 1e-8)          # (B, N)
    bsh = s128_ref[zd + 1:zd + 2, :]                                                # (1, N)

    def conv_same(lhs_bf16, tcat_bf16):
        # lhs: (B*Hp, Kin) bf16 with zero halo rows; tcat: (Kin, k*N) bf16 (dy blocks along N)
        y = jnp.dot(lhs_bf16, tcat_bf16,
                    preferred_element_type=jnp.float32).reshape(B, Hp, k * N)
        out = y[:, 0:H, 0:N]
        for dy in range(1, k):
            out = out + y[:, dy:dy + H, dy * N:(dy + 1) * N]
        return out                                                                  # (B, H, N)

    # ---- main1: modulate input channels, conv, demodulate, Mish ---------------------------
    xp = xp_ref[...]                                                                # (B, Hp, K1) f32
    xs = (xp * s1[:, None, :]).reshape(B * Hp, K1).astype(jnp.bfloat16)
    h1 = _mish(conv_same(xs, t1ts_ref[0]) * d1[:, None, :])                         # (B, H, N)

    # ---- H-halo of the intermediate: zero only the halo rows of the scratch ---------------
    if pad > 0:
        h1p_ref[:, 0:pad, :] = jnp.zeros((B, pad, N), h1p_ref.dtype)
    if Hp - pad - H > 0:
        h1p_ref[:, pad + H:, :] = jnp.zeros((B, Hp - pad - H, N), h1p_ref.dtype)
    h1p_ref[:, pad:pad + H, :] = h1 * s2[:, None, :]        # pre-modulate for main2

    # ---- main2 -----------------------------------------------------------------------------
    h1p = h1p_ref[...].reshape(B * Hp, N).astype(jnp.bfloat16)
    h2 = _mish(conv_same(h1p, t2_ref[...]) * d2[:, None, :])

    # ---- shortcut (conv with eval-BN folded in) + residual add -----------------------------
    xb = xp.reshape(B * Hp, K1).astype(jnp.bfloat16)
    cs = conv_same(xb, t1ts_ref[1])
    o_ref[...] = (h2 + cs + bsh[None, :, :]).astype(o_ref.dtype)


# -----------------------------------------------------------------------------
# Wrapper
# -----------------------------------------------------------------------------
def _round_up(a, m):
    return ((a + m - 1) // m) * m


def _width_toeplitz(w_oikk, W):
    """(Cout, Cin, k, k) conv weight -> (k, W*Cin, W*Cout) matrices lowering a 'same'
    conv along the width dim (width zero-padding folded in)."""
    Cout, Cin, k, _ = w_oikk.shape
    pad = (k - 1) // 2
    w_t = jnp.transpose(w_oikk, (2, 3, 1, 0))                          # (dy, dx, Cin, Cout)
    shifts = jnp.stack([jnp.eye(W, W, k=pad - dx, dtype=w_oikk.dtype)
                        for dx in range(k)])                           # (dx, xin, xout)
    T = jnp.einsum("xab,yxio->yaibo", shifts, w_t)                     # (dy, xin, Cin, xout, Cout)
    return T.reshape(k, W * Cin, W * Cout)


def double_convertible_style_block(x_nchw, z, params, *, k=3, bn_eps=1e-5):
    """Forward of DoubleConvertibleStyleBlock. x is NCHW; params use PyTorch layouts."""
    assert k % 2 == 1
    B, Cin, H, W = x_nchw.shape
    w1 = params["main1_conv_weight"]            # (Cout, Cin, k, k)
    w2 = params["main2_conv_weight"]            # (Cout, Cout, k, k)
    ws = params["shortcut_conv_weight"]         # (Cout, Cin, k, k)
    Cout = w1.shape[0]
    zd = z.shape[1]
    pad = (k - 1) // 2
    Hp = _round_up(H + 2 * pad, 8)              # padded rows (multiple of 8 -> free reshapes)
    K1, N = W * Cin, W * Cout

    # ---- style Linear params, pre-tiled along lanes (+1 of StyleGAN2 folded into bias) ----
    ws1e = jnp.tile(params["main1_style_weight"].T, (1, W))                          # (zd, K1)
    bs1e = jnp.tile(params["main1_style_bias"].reshape(1, Cin) + 1.0, (1, W))        # (1, K1)
    ws2e = jnp.tile(params["main2_style_weight"].T, (1, W))                          # (zd, N)
    bs2e = jnp.tile(params["main2_style_bias"].reshape(1, Cout) + 1.0, (1, W))       # (1, N)

    # ---- demod: pre-tiled squared-weight sums (scaled 1/W so tiled s^2 sums correctly) ----
    wsq1e = jnp.tile(jnp.sum(w1 * w1, axis=(2, 3)).T / W, (W, W))                    # (K1, N)
    wsq2e = jnp.tile(jnp.sum(w2 * w2, axis=(2, 3)).T / W, (W, W))                    # (N, N)

    # ---- fold eval BatchNorm into the shortcut conv ----------------------------------------
    bn_scale = params["bn_weight"] * jax.lax.rsqrt(params["bn_var"] + bn_eps)        # (Cout,)
    ws_f = ws * bn_scale[:, None, None, None]
    bsh = jnp.tile(params["bn_bias"] - params["bn_mean"] * bn_scale, (W,)).reshape(1, N)

    # ---- packed small operands: one 64-lane slab, one 128-lane slab ------------------------
    s64 = jnp.concatenate([ws1e, bs1e], axis=0)                                      # (zd+1, K1)
    r1 = _round_up(zd + 2, 8)
    r2 = r1 + K1
    s128 = jnp.zeros((r2 + N, N), jnp.float32)
    s128 = s128.at[0:zd].set(ws2e).at[zd:zd + 1].set(bs2e).at[zd + 1:zd + 2].set(bsh)
    s128 = s128.at[r1:r1 + K1].set(wsq1e).at[r2:r2 + N].set(wsq2e)

    # ---- Toeplitz conv weights, dy blocks concatenated along N, cast to bf16 ---------------
    def tcat(w):
        t = _width_toeplitz(w, W)                                   # (k, Kin, N)
        return jnp.transpose(t, (1, 0, 2)).reshape(t.shape[1], k * N).astype(jnp.bfloat16)

    t1ts = jnp.stack([tcat(w1), tcat(ws_f)])                        # (2, K1, k*N)
    t2c = tcat(w2)                                                  # (N,  k*N)

    # ---- lane-packed input rows, padded along H to Hp (zeros) ------------------------------
    x_rows = jnp.transpose(x_nchw, (0, 2, 3, 1)).reshape(B, H, K1)
    xp = jnp.pad(x_rows, ((0, 0), (pad, Hp - H - pad), (0, 0)))

    def fullspec(shape):
        return pl.BlockSpec(shape, lambda i: (0,) * len(shape))

    kern = functools.partial(_fused_kernel, B=B, H=H, Hp=Hp, W=W, k=k,
                             zd=zd, r1=r1, r2=r2)
    out = pl.pallas_call(
        kern,
        out_shape=jax.ShapeDtypeStruct((B, H, N), jnp.float32),
        grid=(1,),
        in_specs=[fullspec(z.shape), fullspec(s64.shape), fullspec(s128.shape),
                  fullspec(xp.shape), fullspec(t1ts.shape), fullspec(t2c.shape)],
        out_specs=fullspec((B, H, N)),
        scratch_shapes=[pltpu.VMEM((B, Hp, N), jnp.float32)],
        compiler_params=pltpu.CompilerParams(dimension_semantics=("arbitrary",)),
    )(z, s64, s128, xp, t1ts, t2c)

    # (B, H, W*Cout) -> NCHW
    return jnp.transpose(out.reshape(B, H, W, Cout), (0, 3, 1, 2))


# -----------------------------------------------------------------------------
# Driver
# -----------------------------------------------------------------------------
if __name__ == "__main__":
    B, nc1, nc2, z_dims, H, W, k = 2, 4, 8, 16, 16, 16, 3

    key = jax.random.PRNGKey(0)
    ks = jax.random.split(key, 12)

    x = jax.random.normal(ks[0], (B, nc1, H, W), jnp.float32)   # NCHW, PyTorch layout
    z = jax.random.normal(ks[1], (B, z_dims), jnp.float32)

    kaiming1 = jnp.sqrt(2.0 / (nc1 * k * k))
    kaiming2 = jnp.sqrt(2.0 / (nc2 * k * k))
    lin = 1.0 / jnp.sqrt(jnp.float32(z_dims))

    params = {
        # main1: ConvertibleStyleBlock(nc1 -> nc2)   (PyTorch native layouts)
        "main1_style_weight": jax.random.normal(ks[2], (nc1, z_dims), jnp.float32) * lin,
        "main1_style_bias":   jax.random.normal(ks[3], (nc1,), jnp.float32) * lin,
        "main1_conv_weight":  jax.random.normal(ks[4], (nc2, nc1, k, k), jnp.float32) * kaiming1,
        # main2: ConvertibleStyleBlock(nc2 -> nc2)
        "main2_style_weight": jax.random.normal(ks[5], (nc2, z_dims), jnp.float32) * lin,
        "main2_style_bias":   jax.random.normal(ks[6], (nc2,), jnp.float32) * lin,
        "main2_conv_weight":  jax.random.normal(ks[7], (nc2, nc2, k, k), jnp.float32) * kaiming2,
        # shortcut: ConvBlock(nc1 -> nc2) = bias-free conv + eval BatchNorm (default stats)
        "shortcut_conv_weight": jax.random.normal(ks[8], (nc2, nc1, k, k), jnp.float32) * kaiming1,
        "bn_weight": jnp.ones((nc2,), jnp.float32),
        "bn_bias":   jnp.zeros((nc2,), jnp.float32),
        "bn_mean":   jnp.zeros((nc2,), jnp.float32),
        "bn_var":    jnp.ones((nc2,), jnp.float32),
    }

    out = jax.jit(double_convertible_style_block)(x, z, params)
    jax.block_until_ready(out)
    assert out.shape == (B, nc2, H, W)
    assert bool(jnp.all(jnp.isfinite(out)))
    print("KERNEL_OK")
</pallas_src>

<mosaic_0001>
module attributes {stable_mosaic.version = 11 : i64} {
  func.func @_fused_kernel(%arg0: i32, %arg1: memref<2x16xf32, #tpu.memory_space<vmem>>, %arg2: memref<17x64xf32, #tpu.memory_space<vmem>>, %arg3: memref<216x128xf32, #tpu.memory_space<vmem>>, %arg4: memref<2x24x64xf32, #tpu.memory_space<vmem>>, %arg5: memref<2x64x384xbf16, #tpu.memory_space<vmem>>, %arg6: memref<128x384xbf16, #tpu.memory_space<vmem>>, %arg7: memref<2x16x128xf32, #tpu.memory_space<vmem>>, %arg8: memref<2x24x128xf32, #tpu.memory_space<vmem>>) attributes {dimension_semantics = [#tpu.dimension_semantics<arbitrary>], iteration_bounds = array<i64: 1>, scalar_prefetch = 0 : i64, scratch_operands = 1 : i64, tpu.core_type = #tpu.core_type<tc>, window_params = [{pipeline_mode = #tpu.pipeline_mode<synchronous>, transform_indices = @transform_0, window_bounds = array<i64: 2, 16>}, {pipeline_mode = #tpu.pipeline_mode<synchronous>, transform_indices = @transform_1, window_bounds = array<i64: 17, 64>}, {pipeline_mode = #tpu.pipeline_mode<synchronous>, transform_indices = @transform_2, window_bounds = array<i64: 216, 128>}, {pipeline_mode = #tpu.pipeline_mode<synchronous>, transform_indices = @transform_3, window_bounds = array<i64: 2, 24, 64>}, {pipeline_mode = #tpu.pipeline_mode<synchronous>, transform_indices = @transform_4, window_bounds = array<i64: 2, 64, 384>}, {pipeline_mode = #tpu.pipeline_mode<synchronous>, transform_indices = @transform_5, window_bounds = array<i64: 128, 384>}, {pipeline_mode = #tpu.pipeline_mode<synchronous>, transform_indices = @transform_6, window_bounds = array<i64: 2, 16, 128>}]} {
    %c0 = arith.constant 0 : index
    %c0_0 = arith.constant 0 : index
    %0 = vector.load %arg1[%c0, %c0_0] : memref<2x16xf32, #tpu.memory_space<vmem>>, vector<2x16xf32>
    %c0_1 = arith.constant 0 : index
    %c0_2 = arith.constant 0 : index
    %1 = vector.load %arg2[%c0_1, %c0_2] : memref<17x64xf32, #tpu.memory_space<vmem>>, vector<16x64xf32>
    %cst = arith.constant dense<0.000000e+00> : vector<2x64xf32>
    %2 = tpu.matmul %0, %1, %cst {dimension_numbers = #tpu.dot_dimension_numbers<[1], [0], [0], [1], [0, 0, 1, 1], [], []>} : vector<2x16xf32>, vector<16x64xf32>, vector<2x64xf32> -> vector<2x64xf32>
    %c16 = arith.constant 16 : index
    %c0_3 = arith.constant 0 : index
    %3 = vector.load %arg2[%c16, %c0_3] : memref<17x64xf32, #tpu.memory_space<vmem>>, vector<1x64xf32>
    %4 = vector.broadcast %3 : vector<1x64xf32> to vector<2x64xf32>
    %5 = arith.addf %2, %4 : vector<2x64xf32>
    %6 = arith.mulf %5, %5 : vector<2x64xf32>
    %c24 = arith.constant 24 : index
    %c0_4 = arith.constant 0 : index
    %7 = vector.load %arg3[%c24, %c0_4] : memref<216x128xf32, #tpu.memory_space<vmem>>, vector<64x128xf32>
    %cst_5 = arith.constant dense<0.000000e+00> : vector<2x128xf32>
    %8 = tpu.matmul %6, %7, %cst_5 {dimension_numbers = #tpu.dot_dimension_numbers<[1], [0], [0], [1], [0, 0, 1, 1], [], []>} : vector<2x64xf32>, vector<64x128xf32>, vector<2x128xf32> -> vector<2x128xf32>
    %cst_6 = arith.constant 9.99999993E-9 : f32
    %9 = vector.broadcast %cst_6 : f32 to vector<2x128xf32>
    %10 = arith.addf %8, %9 : vector<2x128xf32>
    %11 = math.rsqrt %10 : vector<2x128xf32>
    %c0_7 = arith.constant 0 : index
    %c0_8 = arith.constant 0 : index
    %12 = vector.load %arg3[%c0_7, %c0_8] : memref<216x128xf32, #tpu.memory_space<vmem>>, vector<16x128xf32>
    %cst_9 = arith.constant dense<0.000000e+00> : vector<2x128xf32>
    %13 = tpu.matmul %0, %12, %cst_9 {dimension_numbers = #tpu.dot_dimension_numbers<[1], [0], [0], [1], [0, 0, 1, 1], [], []>} : vector<2x16xf32>, vector<16x128xf32>, vector<2x128xf32> -> vector<2x128xf32>
    %c16_10 = arith.constant 16 : index
    %c0_11 = arith.constant 0 : index
    %14 = vector.load %arg3[%c16_10, %c0_11] : memref<216x128xf32, #tpu.memory_space<vmem>>, vector<1x128xf32>
    %15 = vector.broadcast %14 : vector<1x128xf32> to vector<2x128xf32>
    %16 = arith.addf %13, %15 : vector<2x128xf32>
    %17 = arith.mulf %16, %16 : vector<2x128xf32>
    %c88 = arith.constant 88 : index
    %c0_12 = arith.constant 0 : index
    %18 = vector.load %arg3[%c88, %c0_12] : memref<216x128xf32, #tpu.memory_space<vmem>>, vector<128x128xf32>
    %cst_13 = arith.constant dense<0.000000e+00> : vector<2x128xf32>
    %19 = tpu.matmul %17, %18, %cst_13 {dimension_numbers = #tpu.dot_dimension_numbers<[1], [0], [0], [1], [0, 0, 1, 1], [], []>} : vector<2x128xf32>, vector<128x128xf32>, vector<2x128xf32> -> vector<2x128xf32>
    %cst_14 = arith.constant 9.99999993E-9 : f32
    %20 = vector.broadcast %cst_14 : f32 to vector<2x128xf32>
    %21 = arith.addf %19, %20 : vector<2x128xf32>
    %22 = math.rsqrt %21 : vector<2x128xf32>
    %c17 = arith.constant 17 : index
    %c0_15 = arith.constant 0 : index
    %23 = vector.load %arg3[%c17, %c0_15] : memref<216x128xf32, #tpu.memory_space<vmem>>, vector<1x128xf32>
    %c0_16 = arith.constant 0 : index
    %c0_17 = arith.constant 0 : index
    %c0_18 = arith.constant 0 : index
    %24 = vector.load %arg4[%c0_16, %c0_17, %c0_18] : memref<2x24x64xf32, #tpu.memory_space<vmem>>, vector<2x24x64xf32>
    %25 = vector.shape_cast %5 : vector<2x64xf32> to vector<2x1x64xf32>
    %26 = vector.broadcast %25 : vector<2x1x64xf32> to vector<2x24x64xf32>
    %27 = arith.mulf %24, %26 : vector<2x24x64xf32>
    %28 = vector.shape_cast %27 : vector<2x24x64xf32> to vector<48x64xf32>
    %29 = arith.truncf %28 : vector<48x64xf32> to vector<48x64xbf16>
    %c0_19 = arith.constant 0 : index
    %c0_20 = arith.constant 0 : index
    %c0_21 = arith.constant 0 : index
    %30 = vector.load %arg5[%c0_19, %c0_20, %c0_21] : memref<2x64x384xbf16, #tpu.memory_space<vmem>>, vector<1x64x384xbf16>
    %31 = vector.shape_cast %30 : vector<1x64x384xbf16> to vector<64x384xbf16>
    %cst_22 = arith.constant dense<0.000000e+00> : vector<48x384xf32>
    %32 = tpu.matmul %29, %31, %cst_22 {dimension_numbers = #tpu.dot_dimension_numbers<[1], [0], [0], [1], [0, 0, 1, 1], [], []>} : vector<48x64xbf16>, vector<64x384xbf16>, vector<48x384xf32> -> vector<48x384xf32>
    %33 = vector.shape_cast %32 : vector<48x384xf32> to vector<2x24x384xf32>
    %34 = vector.extract_strided_slice %33 {offsets = [0, 0, 0], sizes = [2, 16, 128], strides = [1, 1, 1]} : vector<2x24x384xf32> to vector<2x16x128xf32>
    %35 = vector.extract_strided_slice %33 {offsets = [0, 1, 128], sizes = [2, 16, 128], strides = [1, 1, 1]} : vector<2x24x384xf32> to vector<2x16x128xf32>
    %36 = arith.addf %34, %35 : vector<2x16x128xf32>
    %37 = vector.extract_strided_slice %33 {offsets = [0, 2, 256], sizes = [2, 16, 128], strides = [1, 1, 1]} : vector<2x24x384xf32> to vector<2x16x128xf32>
    %38 = arith.addf %36, %37 : vector<2x16x128xf32>
    %39 = vector.shape_cast %11 : vector<2x128xf32> to vector<2x1x128xf32>
    %40 = vector.broadcast %39 : vector<2x1x128xf32> to vector<2x16x128xf32>
    %41 = arith.mulf %38, %40 : vector<2x16x128xf32>
    %cst_23 = arith.constant 2.000000e+01 : f32
    %42 = vector.broadcast %cst_23 : f32 to vector<2x16x128xf32>
    %43 = arith.minimumf %41, %42 : vector<2x16x128xf32>
    %44 = math.exp %43 : vector<2x16x128xf32>
    %cst_24 = arith.constant 2.000000e+00 : f32
    %45 = vector.broadcast %cst_24 : f32 to vector<2x16x128xf32>
    %46 = arith.addf %44, %45 : vector<2x16x128xf32>
    %47 = arith.mulf %44, %46 : vector<2x16x128xf32>
    %48 = arith.mulf %41, %47 : vector<2x16x128xf32>
    %cst_25 = arith.constant 2.000000e+00 : f32
    %49 = vector.broadcast %cst_25 : f32 to vector<2x16x128xf32>
    %50 = arith.addf %47, %49 : vector<2x16x128xf32>
    %51 = tpu.reciprocal %50 {approx = true} : vector<2x16x128xf32> -> vector<2x16x128xf32>
    %52 = arith.mulf %48, %51 : vector<2x16x128xf32>
    %cst_26 = arith.constant 0.000000e+00 : f32
    %53 = vector.broadcast %cst_26 : f32 to vector<2x1x128xf32>
    %c0_27 = arith.constant 0 : index
    %c0_28 = arith.constant 0 : index
    %c0_29 = arith.constant 0 : index
    %54 = vector.load %arg8[%c0_27, %c0_28, %c0_29] : memref<2x24x128xf32, #tpu.memory_space<vmem>>, vector<2x1x128xf32>
    tpu.vector_store %arg8[%c0_27, %c0_28, %c0_29], %53 {strides = array<i32>} : memref<2x24x128xf32, #tpu.memory_space<vmem>>, vector<2x1x128xf32>,
    %cst_30 = arith.constant 0.000000e+00 : f32
    %55 = vector.broadcast %cst_30 : f32 to vector<2x7x128xf32>
    %c0_31 = arith.constant 0 : index
    %c17_32 = arith.constant 17 : index
    %c0_33 = arith.constant 0 : index
    %56 = vector.load %arg8[%c0_31, %c17_32, %c0_33] : memref<2x24x128xf32, #tpu.memory_space<vmem>>, vector<2x7x128xf32>
    tpu.vector_store %arg8[%c0_31, %c17_32, %c0_33], %55 {strides = array<i32>} : memref<2x24x128xf32, #tpu.memory_space<vmem>>, vector<2x7x128xf32>,
    %57 = vector.shape_cast %16 : vector<2x128xf32> to vector<2x1x128xf32>
    %58 = vector.broadcast %57 : vector<2x1x128xf32> to vector<2x16x128xf32>
    %59 = arith.mulf %52, %58 : vector<2x16x128xf32>
    %c0_34 = arith.constant 0 : index
    %c1 = arith.constant 1 : index
    %c0_35 = arith.constant 0 : index
    %60 = vector.load %arg8[%c0_34, %c1, %c0_35] : memref<2x24x128xf32, #tpu.memory_space<vmem>>, vector<2x16x128xf32>
    tpu.vector_store %arg8[%c0_34, %c1, %c0_35], %59 {strides = array<i32>} : memref<2x24x128xf32, #tpu.memory_space<vmem>>, vector<2x16x128xf32>,
    %c0_36 = arith.constant 0 : index
    %c0_37 = arith.constant 0 : index
    %c0_38 = arith.constant 0 : index
    %61 = vector.load %arg8[%c0_36, %c0_37, %c0_38] : memref<2x24x128xf32, #tpu.memory_space<vmem>>, vector<2x24x128xf32>
    %62 = vector.shape_cast %61 : vector<2x24x128xf32> to vector<48x128xf32>
    %63 = arith.truncf %62 : vector<48x128xf32> to vector<48x128xbf16>
    %c0_39 = arith.constant 0 : index
    %c0_40 = arith.constant 0 : index
    %64 = vector.load %arg6[%c0_39, %c0_40] : memref<128x384xbf16, #tpu.memory_space<vmem>>, vector<128x384xbf16>
    %cst_41 = arith.constant dense<0.000000e+00> : vector<48x384xf32>
    %65 = tpu.matmul %63, %64, %cst_41 {dimension_numbers = #tpu.dot_dimension_numbers<[1], [0], [0], [1], [0, 0, 1, 1], [], []>} : vector<48x128xbf16>, vector<128x384xbf16>, vector<48x384xf32> -> vector<48x384xf32>
    %66 = vector.shape_cast %65 : vector<48x384xf32> to vector<2x24x384xf32>
    %67 = vector.extract_strided_slice %66 {offsets = [0, 0, 0], sizes = [2, 16, 128], strides = [1, 1, 1]} : vector<2x24x384xf32> to vector<2x16x128xf32>
    %68 = vector.extract_strided_slice %66 {offsets = [0, 1, 128], sizes = [2, 16, 128], strides = [1, 1, 1]} : vector<2x24x384xf32> to vector<2x16x128xf32>
    %69 = arith.addf %67, %68 : vector<2x16x128xf32>
    %70 = vector.extract_strided_slice %66 {offsets = [0, 2, 256], sizes = [2, 16, 128], strides = [1, 1, 1]} : vector<2x24x384xf32> to vector<2x16x128xf32>
    %71 = arith.addf %69, %70 : vector<2x16x128xf32>
    %72 = vector.shape_cast %22 : vector<2x128xf32> to vector<2x1x128xf32>
    %73 = vector.broadcast %72 : vector<2x1x128xf32> to vector<2x16x128xf32>
    %74 = arith.mulf %71, %73 : vector<2x16x128xf32>
    %cst_42 = arith.constant 2.000000e+01 : f32
    %75 = vector.broadcast %cst_42 : f32 to vector<2x16x128xf32>
    %76 = arith.minimumf %74, %75 : vector<2x16x128xf32>
    %77 = math.exp %76 : vector<2x16x128xf32>
    %cst_43 = arith.constant 2.000000e+00 : f32
    %78 = vector.broadcast %cst_43 : f32 to vector<2x16x128xf32>
    %79 = arith.addf %77, %78 : vector<2x16x128xf32>
    %80 = arith.mulf %77, %79 : vector<2x16x128xf32>
    %81 = arith.mulf %74, %80 : vector<2x16x128xf32>
    %cst_44 = arith.constant 2.000000e+00 : f32
    %82 = vector.broadcast %cst_44 : f32 to vector<2x16x128xf32>
    %83 = arith.addf %80, %82 : vector<2x16x128xf32>
    %84 = tpu.reciprocal %83 {approx = true} : vector<2x16x128xf32> -> vector<2x16x128xf32>
    %85 = arith.mulf %81, %84 : vector<2x16x128xf32>
    %86 = vector.shape_cast %24 : vector<2x24x64xf32> to vector<48x64xf32>
    %87 = arith.truncf %86 : vector<48x64xf32> to vector<48x64xbf16>
    %c1_45 = arith.constant 1 : index
    %c0_46 = arith.constant 0 : index
    %c0_47 = arith.constant 0 : index
    %88 = vector.load %arg5[%c1_45, %c0_46, %c0_47] : memref<2x64x384xbf16, #tpu.memory_space<vmem>>, vector<1x64x384xbf16>
    %89 = vector.shape_cast %88 : vector<1x64x384xbf16> to vector<64x384xbf16>
    %cst_48 = arith.constant dense<0.000000e+00> : vector<48x384xf32>
    %90 = tpu.matmul %87, %89, %cst_48 {dimension_numbers = #tpu.dot_dimension_numbers<[1], [0], [0], [1], [0, 0, 1, 1], [], []>} : vector<48x64xbf16>, vector<64x384xbf16>, vector<48x384xf32> -> vector<48x384xf32>
    %91 = vector.shape_cast %90 : vector<48x384xf32> to vector<2x24x384xf32>
    %92 = vector.extract_strided_slice %91 {offsets = [0, 0, 0], sizes = [2, 16, 128], strides = [1, 1, 1]} : vector<2x24x384xf32> to vector<2x16x128xf32>
    %93 = vector.extract_strided_slice %91 {offsets = [0, 1, 128], sizes = [2, 16, 128], strides = [1, 1, 1]} : vector<2x24x384xf32> to vector<2x16x128xf32>
    %94 = arith.addf %92, %93 : vector<2x16x128xf32>
    %95 = vector.extract_strided_slice %91 {offsets = [0, 2, 256], sizes = [2, 16, 128], strides = [1, 1, 1]} : vector<2x24x384xf32> to vector<2x16x128xf32>
    %96 = arith.addf %94, %95 : vector<2x16x128xf32>
    %97 = arith.addf %85, %96 : vector<2x16x128xf32>
    %98 = vector.shape_cast %23 : vector<1x128xf32> to vector<1x1x128xf32>
    %99 = vector.broadcast %98 : vector<1x1x128xf32> to vector<2x16x128xf32>
    %100 = arith.addf %97, %99 : vector<2x16x128xf32>
    %c0_49 = arith.constant 0 : index
    %c0_50 = arith.constant 0 : index
    %c0_51 = arith.constant 0 : index
    %101 = vector.load %arg7[%c0_49, %c0_50, %c0_51] : memref<2x16x128xf32, #tpu.memory_space<vmem>>, vector<2x16x128xf32>
    tpu.vector_store %arg7[%c0_49, %c0_50, %c0_51], %100 {strides = array<i32>} : memref<2x16x128xf32, #tpu.memory_space<vmem>>, vector<2x16x128xf32>,
    return
  }
  func.func @transform_0(%arg0: i32) -> (i32, i32) {
    %c0_i32 = arith.constant 0 : i32
    %c0_i32_0 = arith.constant 0 : i32
    %c0_i32_1 = arith.constant 0 : i32
    return %c0_i32, %c0_i32_0 : i32, i32
  }
  func.func @transform_1(%arg0: i32) -> (i32, i32) {
    %c0_i32 = arith.constant 0 : i32
    %c0_i32_0 = arith.constant 0 : i32
    %c0_i32_1 = arith.constant 0 : i32
    return %c0_i32, %c0_i32_0 : i32, i32
  }
  func.func @transform_2(%arg0: i32) -> (i32, i32) {
    %c0_i32 = arith.constant 0 : i32
    %c0_i32_0 = arith.constant 0 : i32
    %c0_i32_1 = arith.constant 0 : i32
    return %c0_i32, %c0_i32_0 : i32, i32
  }
  func.func @transform_3(%arg0: i32) -> (i32, i32, i32) {
    %c0_i32 = arith.constant 0 : i32
    %c0_i32_0 = arith.constant 0 : i32
    %c0_i32_1 = arith.constant 0 : i32
    %c0_i32_2 = arith.constant 0 : i32
    return %c0_i32, %c0_i32_0, %c0_i32_1 : i32, i32, i32
  }
  func.func @transform_4(%arg0: i32) -> (i32, i32, i32) {
    %c0_i32 = arith.constant 0 : i32
    %c0_i32_0 = arith.constant 0 : i32
    %c0_i32_1 = arith.constant 0 : i32
    %c0_i32_2 = arith.constant 0 : i32
    return %c0_i32, %c0_i32_0, %c0_i32_1 : i32, i32, i32
  }
  func.func @transform_5(%arg0: i32) -> (i32, i32) {
    %c0_i32 = arith.constant 0 : i32
    %c0_i32_0 = arith.constant 0 : i32
    %c0_i32_1 = arith.constant 0 : i32
    return %c0_i32, %c0_i32_0 : i32, i32
  }
  func.func @transform_6(%arg0: i32) -> (i32, i32, i32) {
    %c0_i32 = arith.constant 0 : i32
    %c0_i32_0 = arith.constant 0 : i32
    %c0_i32_1 = arith.constant 0 : i32
    %c0_i32_2 = arith.constant 0 : i32
    return %c0_i32, %c0_i32_0, %c0_i32_1 : i32, i32, i32
  }
}

</mosaic_0001>

<bundles_post_ra>
// kernel: tile.68
= control target key start
LH: loop header
LB: loop body
LE: loop exit
PB: predicated region body
PF: predicated region fallthrough
CT: control target
= control target key end

     0   :  { %s28_s0 = inlined_call_operand.vmem [shape: f32[8], index: 0, kind: input, shape index: {}]   ;;  %s29_s1 = inlined_call_operand.vmem [shape: f32[16,8], index: 1, kind: output, shape index: {}]  }
   0x1   :  { %v4_v0 = vld [vmem:[%s28_s0] ss:$0 sm:$0xff] }
   0x2   :  { %5 = vst [vmem:[%s29_s1] sm:$0xff] %v4_v0  ;;  %8 = vst [vmem:[%s29_s1 + $0x8] sm:$0xff] %v4_v0 }

// kernel: tile.58
= control target key start
LH: loop header
LB: loop body
LE: loop exit
PB: predicated region body
PF: predicated region fallthrough
CT: control target
= control target key end

     0   :  { %s938_s0 = inlined_call_operand.vmem [shape: f32[4,8], index: 0, kind: input, shape index: {}]   ;;  %s939_s1 = inlined_call_operand.vmem [shape: f32[16,4,16,8], index: 1, kind: output, shape index: {}]  }
   0x1   :  { %v409_v0 = vld [vmem:[%s938_s0] ss:$0 sm:$0xff]  ;;  %v414_v1 = vld [vmem:[%s938_s0 + $0x1] ss:$0 sm:$0xff]  ;;  %v419_v2 = vld [vmem:[%s938_s0 + $0x2] ss:$0 sm:$0xff] }
   0x2   :  { %5 = vst [vmem:[%s939_s1] sm:$0xff] %v409_v0  ;;  %266 = vst [vmem:[%s939_s1 + $0x40] sm:$0xff] %v409_v0  ;;  %v616_v3 = vld [vmem:[%s938_s0 + $0x3] ss:$0 sm:$0xff] }
   0x3   :  { %267 = vst [vmem:[%s939_s1 + $0x80] sm:$0xff] %v409_v0  ;;  %268 = vst [vmem:[%s939_s1 + $0xc0] sm:$0xff] %v409_v0 }
   0x4   :  { %269 = vst [vmem:[%s939_s1 + $0x100] sm:$0xff] %v409_v0  ;;  %270 = vst [vmem:[%s939_s1 + $0x140] sm:$0xff] %v409_v0 }
   0x5   :  { %271 = vst [vmem:[%s939_s1 + $0x180] sm:$0xff] %v409_v0  ;;  %272 = vst [vmem:[%s939_s1 + $0x1c0] sm:$0xff] %v409_v0 }
   0x6   :  { %273 = vst [vmem:[%s939_s1 + $0x200] sm:$0xff] %v409_v0  ;;  %274 = vst [vmem:[%s939_s1 + $0x240] sm:$0xff] %v409_v0 }
   0x7   :  { %275 = vst [vmem:[%s939_s1 + $0x280] sm:$0xff] %v409_v0  ;;  %276 = vst [vmem:[%s939_s1 + $0x2c0] sm:$0xff] %v409_v0 }
   0x8   :  { %277 = vst [vmem:[%s939_s1 + $0x300] sm:$0xff] %v409_v0  ;;  %278 = vst [vmem:[%s939_s1 + $0x340] sm:$0xff] %v409_v0 }
   0x9   :  { %279 = vst [vmem:[%s939_s1 + $0x380] sm:$0xff] %v409_v0  ;;  %280 = vst [vmem:[%s939_s1 + $0x3c0] sm:$0xff] %v409_v0 }
   0xa   :  { %282 = vst [vmem:[%s939_s1 + $0x10] sm:$0xff] %v414_v1  ;;  %283 = vst [vmem:[%s939_s1 + $0x50] sm:$0xff] %v414_v1 }
   0xb   :  { %284 = vst [vmem:[%s939_s1 + $0x90] sm:$0xff] %v414_v1  ;;  %285 = vst [vmem:[%s939_s1 + $0xd0] sm:$0xff] %v414_v1 }
   0xc   :  { %286 = vst [vmem:[%s939_s1 + $0x110] sm:$0xff] %v414_v1  ;;  %287 = vst [vmem:[%s939_s1 + $0x150] sm:$0xff] %v414_v1 }
   0xd   :  { %288 = vst [vmem:[%s939_s1 + $0x190] sm:$0xff] %v414_v1  ;;  %289 = vst [vmem:[%s939_s1 + $0x1d0] sm:$0xff] %v414_v1 }
   0xe   :  { %290 = vst [vmem:[%s939_s1 + $0x210] sm:$0xff] %v414_v1  ;;  %291 = vst [vmem:[%s939_s1 + $0x250] sm:$0xff] %v414_v1 }
   0xf   :  { %292 = vst [vmem:[%s939_s1 + $0x290] sm:$0xff] %v414_v1  ;;  %293 = vst [vmem:[%s939_s1 + $0x2d0] sm:$0xff] %v414_v1 }
  0x10   :  { %294 = vst [vmem:[%s939_s1 + $0x310] sm:$0xff] %v414_v1  ;;  %295 = vst [vmem:[%s939_s1 + $0x350] sm:$0xff] %v414_v1 }
  0x11   :  { %296 = vst [vmem:[%s939_s1 + $0x390] sm:$0xff] %v414_v1  ;;  %297 = vst [vmem:[%s939_s1 + $0x3d0] sm:$0xff] %v414_v1 }
  0x12   :  { %299 = vst [vmem:[%s939_s1 + $0x20] sm:$0xff] %v419_v2  ;;  %300 = vst [vmem:[%s939_s1 + $0x60] sm:$0xff] %v419_v2 }
  0x13   :  { %301 = vst [vmem:[%s939_s1 + $0xa0] sm:$0xff] %v419_v2  ;;  %302 = vst [vmem:[%s939_s1 + $0xe0] sm:$0xff] %v419_v2 }
  0x14   :  { %303 = vst [vmem:[%s939_s1 + $0x120] sm:$0xff] %v419_v2  ;;  %304 = vst [vmem:[%s939_s1 + $0x160] sm:$0xff] %v419_v2 }
  0x15   :  { %305 = vst [vmem:[%s939_s1 + $0x1a0] sm:$0xff] %v419_v2  ;;  %306 = vst [vmem:[%s939_s1 + $0x1e0] sm:$0xff] %v419_v2 }
  0x16   :  { %307 = vst [vmem:[%s939_s1 + $0x220] sm:$0xff] %v419_v2  ;;  %308 = vst [vmem:[%s939_s1 + $0x260] sm:$0xff] %v419_v2 }
  0x17   :  { %309 = vst [vmem:[%s939_s1 + $0x2a0] sm:$0xff] %v419_v2  ;;  %310 = vst [vmem:[%s939_s1 + $0x2e0] sm:$0xff] %v419_v2 }
  0x18   :  { %311 = vst [vmem:[%s939_s1 + $0x320] sm:$0xff] %v419_v2  ;;  %312 = vst [vmem:[%s939_s1 + $0x360] sm:$0xff] %v419_v2 }
  0x19   :  { %313 = vst [vmem:[%s939_s1 + $0x3a0] sm:$0xff] %v419_v2  ;;  %314 = vst [vmem:[%s939_s1 + $0x3e0] sm:$0xff] %v419_v2 }
  0x1a   :  { %332 = vst [vmem:[%s939_s1 + $0x8] sm:$0xff] %v409_v0  ;;  %333 = vst [vmem:[%s939_s1 + $0x48] sm:$0xff] %v409_v0 }
  0x1b   :  { %334 = vst [vmem:[%s939_s1 + $0x88] sm:$0xff] %v409_v0  ;;  %335 = vst [vmem:[%s939_s1 + $0xc8] sm:$0xff] %v409_v0 }
  0x1c   :  { %336 = vst [vmem:[%s939_s1 + $0x108] sm:$0xff] %v409_v0  ;;  %337 = vst [vmem:[%s939_s1 + $0x148] sm:$0xff] %v409_v0 }
  0x1d   :  { %338 = vst [vmem:[%s939_s1 + $0x188] sm:$0xff] %v409_v0  ;;  %339 = vst [vmem:[%s939_s1 + $0x1c8] sm:$0xff] %v409_v0 }
  0x1e   :  { %340 = vst [vmem:[%s939_s1 + $0x208] sm:$0xff] %v409_v0  ;;  %341 = vst [vmem:[%s939_s1 + $0x248] sm:$0xff] %v409_v0 }
  0x1f   :  { %342 = vst [vmem:[%s939_s1 + $0x288] sm:$0xff] %v409_v0  ;;  %343 = vst [vmem:[%s939_s1 + $0x2c8] sm:$0xff] %v409_v0 }
  0x20   :  { %344 = vst [vmem:[%s939_s1 + $0x308] sm:$0xff] %v409_v0  ;;  %345 = vst [vmem:[%s939_s1 + $0x348] sm:$0xff] %v409_v0 }
  0x21   :  { %346 = vst [vmem:[%s939_s1 + $0x388] sm:$0xff] %v409_v0  ;;  %347 = vst [vmem:[%s939_s1 + $0x3c8] sm:$0xff] %v409_v0 }
  0x22   :  { %348 = vst [vmem:[%s939_s1 + $0x18] sm:$0xff] %v414_v1  ;;  %349 = vst [vmem:[%s939_s1 + $0x58] sm:$0xff] %v414_v1 }
  0x23   :  { %350 = vst [vmem:[%s939_s1 + $0x98] sm:$0xff] %v414_v1  ;;  %351 = vst [vmem:[%s939_s1 + $0xd8] sm:$0xff] %v414_v1 }
  0x24   :  { %352 = vst [vmem:[%s939_s1 + $0x118] sm:$0xff] %v414_v1  ;;  %353 = vst [vmem:[%s939_s1 + $0x158] sm:$0xff] %v414_v1 }
  0x25   :  { %354 = vst [vmem:[%s939_s1 + $0x198] sm:$0xff] %v414_v1  ;;  %355 = vst [vmem:[%s939_s1 + $0x1d8] sm:$0xff] %v414_v1 }
  0x26   :  { %356 = vst [vmem:[%s939_s1 + $0x218] sm:$0xff] %v414_v1  ;;  %357 = vst [vmem:[%s939_s1 + $0x258] sm:$0xff] %v414_v1 }
  0x27   :  { %358 = vst [vmem:[%s939_s1 + $0x298] sm:$0xff] %v414_v1  ;;  %359 = vst [vmem:[%s939_s1 + $0x2d8] sm:$0xff] %v414_v1 }
  0x28   :  { %360 = vst [vmem:[%s939_s1 + $0x318] sm:$0xff] %v414_v1  ;;  %361 = vst [vmem:[%s939_s1 + $0x358] sm:$0xff] %v414_v1 }
  0x29   :  { %362 = vst [vmem:[%s939_s1 + $0x398] sm:$0xff] %v414_v1  ;;  %363 = vst [vmem:[%s939_s1 + $0x3d8] sm:$0xff] %v414_v1 }
  0x2a   :  { %364 = vst [vmem:[%s939_s1 + $0x28] sm:$0xff] %v419_v2  ;;  %365 = vst [vmem:[%s939_s1 + $0x68] sm:$0xff] %v419_v2 }
  0x2b   :  { %366 = vst [vmem:[%s939_s1 + $0xa8] sm:$0xff] %v419_v2  ;;  %367 = vst [vmem:[%s939_s1 + $0xe8] sm:$0xff] %v419_v2 }
  0x2c   :  { %368 = vst [vmem:[%s939_s1 + $0x128] sm:$0xff] %v419_v2  ;;  %369 = vst [vmem:[%s939_s1 + $0x168] sm:$0xff] %v419_v2 }
  0x2d   :  { %370 = vst [vmem:[%s939_s1 + $0x1a8] sm:$0xff] %v419_v2  ;;  %371 = vst [vmem:[%s939_s1 + $0x1e8] sm:$0xff] %v419_v2 }
  0x2e   :  { %372 = vst [vmem:[%s939_s1 + $0x228] sm:$0xff] %v419_v2  ;;  %373 = vst [vmem:[%s939_s1 + $0x268] sm:$0xff] %v419_v2 }
  0x2f   :  { %374 = vst [vmem:[%s939_s1 + $0x2a8] sm:$0xff] %v419_v2  ;;  %375 = vst [vmem:[%s939_s1 + $0x2e8] sm:$0xff] %v419_v2 }
  0x30   :  { %376 = vst [vmem:[%s939_s1 + $0x328] sm:$0xff] %v419_v2  ;;  %377 = vst [vmem:[%s939_s1 + $0x368] sm:$0xff] %v419_v2 }
  0x31   :  { %378 = vst [vmem:[%s939_s1 + $0x3a8] sm:$0xff] %v419_v2  ;;  %379 = vst [vmem:[%s939_s1 + $0x3e8] sm:$0xff] %v419_v2 }
  0x32   :  { %316 = vst [vmem:[%s939_s1 + $0x30] sm:$0xff] %v616_v3  ;;  %317 = vst [vmem:[%s939_s1 + $0x70] sm:$0xff] %v616_v3 }
  0x33   :  { %318 = vst [vmem:[%s939_s1 + $0xb0] sm:$0xff] %v616_v3  ;;  %319 = vst [vmem:[%s939_s1 + $0xf0] sm:$0xff] %v616_v3 }
  0x34   :  { %320 = vst [vmem:[%s939_s1 + $0x130] sm:$0xff] %v616_v3  ;;  %321 = vst [vmem:[%s939_s1 + $0x170] sm:$0xff] %v616_v3 }
  0x35   :  { %322 = vst [vmem:[%s939_s1 + $0x1b0] sm:$0xff] %v616_v3  ;;  %323 = vst [vmem:[%s939_s1 + $0x1f0] sm:$0xff] %v616_v3 }
  0x36   :  { %324 = vst [vmem:[%s939_s1 + $0x230] sm:$0xff] %v616_v3  ;;  %325 = vst [vmem:[%s939_s1 + $0x270] sm:$0xff] %v616_v3 }
  0x37   :  { %326 = vst [vmem:[%s939_s1 + $0x2b0] sm:$0xff] %v616_v3  ;;  %327 = vst [vmem:[%s939_s1 + $0x2f0] sm:$0xff] %v616_v3 }
  0x38   :  { %328 = vst [vmem:[%s939_s1 + $0x330] sm:$0xff] %v616_v3  ;;  %329 = vst [vmem:[%s939_s1 + $0x370] sm:$0xff] %v616_v3 }
  0x39   :  { %330 = vst [vmem:[%s939_s1 + $0x3b0] sm:$0xff] %v616_v3  ;;  %331 = vst [vmem:[%s939_s1 + $0x3f0] sm:$0xff] %v616_v3 }
  0x3a   :  { %380 = vst [vmem:[%s939_s1 + $0x38] sm:$0xff] %v616_v3  ;;  %381 = vst [vmem:[%s939_s1 + $0x78] sm:$0xff] %v616_v3 }
  0x3b   :  { %382 = vst [vmem:[%s939_s1 + $0xb8] sm:$0xff] %v616_v3  ;;  %383 = vst [vmem:[%s939_s1 + $0xf8] sm:$0xff] %v616_v3 }
  0x3c   :  { %384 = vst [vmem:[%s939_s1 + $0x138] sm:$0xff] %v616_v3  ;;  %385 = vst [vmem:[%s939_s1 + $0x178] sm:$0xff] %v616_v3 }
  0x3d   :  { %386 = vst [vmem:[%s939_s1 + $0x1b8] sm:$0xff] %v616_v3  ;;  %387 = vst [vmem:[%s939_s1 + $0x1f8] sm:$0xff] %v616_v3 }
  0x3e   :  { %388 = vst [vmem:[%s939_s1 + $0x238] sm:$0xff] %v616_v3  ;;  %389 = vst [vmem:[%s939_s1 + $0x278] sm:$0xff] %v616_v3 }
  0x3f   :  { %390 = vst [vmem:[%s939_s1 + $0x2b8] sm:$0xff] %v616_v3  ;;  %391 = vst [vmem:[%s939_s1 + $0x2f8] sm:$0xff] %v616_v3 }
  0x40   :  { %392 = vst [vmem:[%s939_s1 + $0x338] sm:$0xff] %v616_v3  ;;  %393 = vst [vmem:[%s939_s1 + $0x378] sm:$0xff] %v616_v3 }
  0x41   :  { %394 = vst [vmem:[%s939_s1 + $0x3b8] sm:$0xff] %v616_v3  ;;  %395 = vst [vmem:[%s939_s1 + $0x3f8] sm:$0xff] %v616_v3 }

// kernel: tile.63
= control target key start
LH: loop header
LB: loop body
LE: loop exit
PB: predicated region body
PF: predicated region fallthrough
CT: control target
= control target key end

     0   :  { %s1866_s0 = inlined_call_operand.vmem [shape: f32[8,8], index: 0, kind: input, shape index: {}]   ;;  %s1867_s1 = inlined_call_operand.vmem [shape: f32[16,8,16,8], index: 1, kind: output, shape index: {}]  }
   0x1   :  { %v805_v0 = vld [vmem:[%s1866_s0] ss:$0 sm:$0xff]  ;;  %v810_v1 = vld [vmem:[%s1866_s0 + $0x1] ss:$0 sm:$0xff]  ;;  %v815_v2 = vld [vmem:[%s1866_s0 + $0x2] ss:$0 sm:$0xff] }
   0x2   :  { %5 = vst [vmem:[%s1867_s1] sm:$0xff] %v805_v0  ;;  %530 = vst [vmem:[%s1867_s1 + $0x80] sm:$0xff] %v805_v0  ;;  %v1012_v3 = vld [vmem:[%s1866_s0 + $0x3] ss:$0 sm:$0xff]  ;;  %v1017_v4 = vld [vmem:[%s1866_s0 + $0x4] ss:$0 sm:$0xff] }
   0x3   :  { %531 = vst [vmem:[%s1867_s1 + $0x100] sm:$0xff] %v805_v0  ;;  %532 = vst [vmem:[%s1867_s1 + $0x180] sm:$0xff] %v805_v0  ;;  %v1022_v5 = vld [vmem:[%s1866_s0 + $0x5] ss:$0 sm:$0xff]  ;;  %v1411_v6 = vld [vmem:[%s1866_s0 + $0x6] ss:$0 sm:$0xff] }
   0x4   :  { %533 = vst [vmem:[%s1867_s1 + $0x200] sm:$0xff] %v805_v0  ;;  %534 = vst [vmem:[%s1867_s1 + $0x280] sm:$0xff] %v805_v0  ;;  %v1416_v7 = vld [vmem:[%s1866_s0 + $0x7] ss:$0 sm:$0xff] }
   0x5   :  { %535 = vst [vmem:[%s1867_s1 + $0x300] sm:$0xff] %v805_v0  ;;  %536 = vst [vmem:[%s1867_s1 + $0x380] sm:$0xff] %v805_v0 }
   0x6   :  { %537 = vst [vmem:[%s1867_s1 + $0x400] sm:$0xff] %v805_v0  ;;  %538 = vst [vmem:[%s1867_s1 + $0x480] sm:$0xff] %v805_v0 }
   0x7   :  { %539 = vst [vmem:[%s1867_s1 + $0x500] sm:$0xff] %v805_v0  ;;  %540 = vst [vmem:[%s1867_s1 + $0x580] sm:$0xff] %v805_v0 }
   0x8   :  { %541 = vst [vmem:[%s1867_s1 + $0x600] sm:$0xff] %v805_v0  ;;  %542 = vst [vmem:[%s1867_s1 + $0x680] sm:$0xff] %v805_v0 }
   0x9   :  { %543 = vst [vmem:[%s1867_s1 + $0x700] sm:$0xff] %v805_v0  ;;  %544 = vst [vmem:[%s1867_s1 + $0x780] sm:$0xff] %v805_v0 }
   0xa   :  { %546 = vst [vmem:[%s1867_s1 + $0x10] sm:$0xff] %v810_v1  ;;  %547 = vst [vmem:[%s1867_s1 + $0x90] sm:$0xff] %v810_v1 }
   0xb   :  { %548 = vst [vmem:[%s1867_s1 + $0x110] sm:$0xff] %v810_v1  ;;  %549 = vst [vmem:[%s1867_s1 + $0x190] sm:$0xff] %v810_v1 }
   0xc   :  { %550 = vst [vmem:[%s1867_s1 + $0x210] sm:$0xff] %v810_v1  ;;  %551 = vst [vmem:[%s1867_s1 + $0x290] sm:$0xff] %v810_v1 }
   0xd   :  { %552 = vst [vmem:[%s1867_s1 + $0x310] sm:$0xff] %v810_v1  ;;  %553 = vst [vmem:[%s1867_s1 + $0x390] sm:$0xff] %v810_v1 }
   0xe   :  { %554 = vst [vmem:[%s1867_s1 + $0x410] sm:$0xff] %v810_v1  ;;  %555 = vst [vmem:[%s1867_s1 + $0x490] sm:$0xff] %v810_v1 }
   0xf   :  { %556 = vst [vmem:[%s1867_s1 + $0x510] sm:$0xff] %v810_v1  ;;  %557 = vst [vmem:[%s1867_s1 + $0x590] sm:$0xff] %v810_v1 }
  0x10   :  { %558 = vst [vmem:[%s1867_s1 + $0x610] sm:$0xff] %v810_v1  ;;  %559 = vst [vmem:[%s1867_s1 + $0x690] sm:$0xff] %v810_v1 }
  0x11   :  { %560 = vst [vmem:[%s1867_s1 + $0x710] sm:$0xff] %v810_v1  ;;  %561 = vst [vmem:[%s1867_s1 + $0x790] sm:$0xff] %v810_v1 }
  0x12   :  { %563 = vst [vmem:[%s1867_s1 + $0x20] sm:$0xff] %v815_v2  ;;  %564 = vst [vmem:[%s1867_s1 + $0xa0] sm:$0xff] %v815_v2 }
  0x13   :  { %565 = vst [vmem:[%s1867_s1 + $0x120] sm:$0xff] %v815_v2  ;;  %566 = vst [vmem:[%s1867_s1 + $0x1a0] sm:$0xff] %v815_v2 }
  0x14   :  { %567 = vst [vmem:[%s1867_s1 + $0x220] sm:$0xff] %v815_v2  ;;  %568 = vst [vmem:[%s1867_s1 + $0x2a0] sm:$0xff] %v815_v2 }
  0x15   :  { %569 = vst [vmem:[%s1867_s1 + $0x320] sm:$0xff] %v815_v2  ;;  %570 = vst [vmem:[%s1867_s1 + $0x3a0] sm:$0xff] %v815_v2 }
  0x16   :  { %571 = vst [vmem:[%s1867_s1 + $0x420] sm:$0xff] %v815_v2  ;;  %572 = vst [vmem:[%s1867_s1 + $0x4a0] sm:$0xff] %v815_v2 }
  0x17   :  { %573 = vst [vmem:[%s1867_s1 + $0x520] sm:$0xff] %v815_v2  ;;  %574 = vst [vmem:[%s1867_s1 + $0x5a0] sm:$0xff] %v815_v2 }
  0x18   :  { %575 = vst [vmem:[%s1867_s1 + $0x620] sm:$0xff] %v815_v2  ;;  %576 = vst [vmem:[%s1867_s1 + $0x6a0] sm:$0xff] %v815_v2 }
  0x19   :  { %577 = vst [vmem:[%s1867_s1 + $0x720] sm:$0xff] %v815_v2  ;;  %578 = vst [vmem:[%s1867_s1 + $0x7a0] sm:$0xff] %v815_v2 }
  0x1a   :  { %664 = vst [vmem:[%s1867_s1 + $0x8] sm:$0xff] %v805_v0  ;;  %665 = vst [vmem:[%s1867_s1 + $0x88] sm:$0xff] %v805_v0 }
  0x1b   :  { %666 = vst [vmem:[%s1867_s1 + $0x108] sm:$0xff] %v805_v0  ;;  %667 = vst [vmem:[%s1867_s1 + $0x188] sm:$0xff] %v805_v0 }
  0x1c   :  { %668 = vst [vmem:[%s1867_s1 + $0x208] sm:$0xff] %v805_v0  ;;  %669 = vst [vmem:[%s1867_s1 + $0x288] sm:$0xff] %v805_v0 }
  0x1d   :  { %670 = vst [vmem:[%s1867_s1 + $0x308] sm:$0xff] %v805_v0  ;;  %671 = vst [vmem:[%s1867_s1 + $0x388] sm:$0xff] %v805_v0 }
  0x1e   :  { %672 = vst [vmem:[%s1867_s1 + $0x408] sm:$0xff] %v805_v0  ;;  %673 = vst [vmem:[%s1867_s1 + $0x488] sm:$0xff] %v805_v0 }
  0x1f   :  { %674 = vst [vmem:[%s1867_s1 + $0x508] sm:$0xff] %v805_v0  ;;  %675 = vst [vmem:[%s1867_s1 + $0x588] sm:$0xff] %v805_v0 }
  0x20   :  { %676 = vst [vmem:[%s1867_s1 + $0x608] sm:$0xff] %v805_v0  ;;  %677 = vst [vmem:[%s1867_s1 + $0x688] sm:$0xff] %v805_v0 }
  0x21   :  { %678 = vst [vmem:[%s1867_s1 + $0x708] sm:$0xff] %v805_v0  ;;  %679 = vst [vmem:[%s1867_s1 + $0x788] sm:$0xff] %v805_v0 }
  0x22   :  { %680 = vst [vmem:[%s1867_s1 + $0x18] sm:$0xff] %v810_v1  ;;  %681 = vst [vmem:[%s1867_s1 + $0x98] sm:$0xff] %v810_v1 }
  0x23   :  { %682 = vst [vmem:[%s1867_s1 + $0x118] sm:$0xff] %v810_v1  ;;  %683 = vst [vmem:[%s1867_s1 + $0x198] sm:$0xff] %v810_v1 }
  0x24   :  { %684 = vst [vmem:[%s1867_s1 + $0x218] sm:$0xff] %v810_v1  ;;  %685 = vst [vmem:[%s1867_s1 + $0x298] sm:$0xff] %v810_v1 }
  0x25   :  { %686 = vst [vmem:[%s1867_s1 + $0x318] sm:$0xff] %v810_v1  ;;  %687 = vst [vmem:[%s1867_s1 + $0x398] sm:$0xff] %v810_v1 }
  0x26   :  { %688 = vst [vmem:[%s1867_s1 + $0x418] sm:$0xff] %v810_v1  ;;  %689 = vst [vmem:[%s1867_s1 + $0x498] sm:$0xff] %v810_v1 }
  0x27   :  { %690 = vst [vmem:[%s1867_s1 + $0x518] sm:$0xff] %v810_v1  ;;  %691 = vst [vmem:[%s1867_s1 + $0x598] sm:$0xff] %v810_v1 }
  0x28   :  { %692 = vst [vmem:[%s1867_s1 + $0x618] sm:$0xff] %v810_v1  ;;  %693 = vst [vmem:[%s1867_s1 + $0x698] sm:$0xff] %v810_v1 }
  0x29   :  { %694 = vst [vmem:[%s1867_s1 + $0x718] sm:$0xff] %v810_v1  ;;  %695 = vst [vmem:[%s1867_s1 + $0x798] sm:$0xff] %v810_v1 }
  0x2a   :  { %696 = vst [vmem:[%s1867_s1 + $0x28] sm:$0xff] %v815_v2  ;;  %697 = vst [vmem:[%s1867_s1 + $0xa8] sm:$0xff] %v815_v2 }
  0x2b   :  { %698 = vst [vmem:[%s1867_s1 + $0x128] sm:$0xff] %v815_v2  ;;  %699 = vst [vmem:[%s1867_s1 + $0x1a8] sm:$0xff] %v815_v2 }
  0x2c   :  { %700 = vst [vmem:[%s1867_s1 + $0x228] sm:$0xff] %v815_v2  ;;  %701 = vst [vmem:[%s1867_s1 + $0x2a8] sm:$0xff] %v815_v2 }
  0x2d   :  { %702 = vst [vmem:[%s1867_s1 + $0x328] sm:$0xff] %v815_v2  ;;  %703 = vst [vmem:[%s1867_s1 + $0x3a8] sm:$0xff] %v815_v2 }
  0x2e   :  { %704 = vst [vmem:[%s1867_s1 + $0x428] sm:$0xff] %v815_v2  ;;  %705 = vst [vmem:[%s1867_s1 + $0x4a8] sm:$0xff] %v815_v2 }
  0x2f   :  { %706 = vst [vmem:[%s1867_s1 + $0x528] sm:$0xff] %v815_v2  ;;  %707 = vst [vmem:[%s1867_s1 + $0x5a8] sm:$0xff] %v815_v2 }
  0x30   :  { %708 = vst [vmem:[%s1867_s1 + $0x628] sm:$0xff] %v815_v2  ;;  %709 = vst [vmem:[%s1867_s1 + $0x6a8] sm:$0xff] %v815_v2 }
  0x31   :  { %710 = vst [vmem:[%s1867_s1 + $0x728] sm:$0xff] %v815_v2  ;;  %711 = vst [vmem:[%s1867_s1 + $0x7a8] sm:$0xff] %v815_v2 }
  0x32   :  { %580 = vst [vmem:[%s1867_s1 + $0x30] sm:$0xff] %v1012_v3  ;;  %581 = vst [vmem:[%s1867_s1 + $0xb0] sm:$0xff] %v1012_v3 }
  0x33   :  { %582 = vst [vmem:[%s1867_s1 + $0x130] sm:$0xff] %v1012_v3  ;;  %583 = vst [vmem:[%s1867_s1 + $0x1b0] sm:$0xff] %v1012_v3 }
  0x34   :  { %584 = vst [vmem:[%s1867_s1 + $0x230] sm:$0xff] %v1012_v3  ;;  %585 = vst [vmem:[%s1867_s1 + $0x2b0] sm:$0xff] %v1012_v3 }
  0x35   :  { %586 = vst [vmem:[%s1867_s1 + $0x330] sm:$0xff] %v1012_v3  ;;  %587 = vst [vmem:[%s1867_s1 + $0x3b0] sm:$0xff] %v1012_v3 }
  0x36   :  { %588 = vst [vmem:[%s1867_s1 + $0x430] sm:$0xff] %v1012_v3  ;;  %589 = vst [vmem:[%s1867_s1 + $0x4b0] sm:$0xff] %v1012_v3 }
  0x37   :  { %590 = vst [vmem:[%s1867_s1 + $0x530] sm:$0xff] %v1012_v3  ;;  %591 = vst [vmem:[%s1867_s1 + $0x5b0] sm:$0xff] %v1012_v3 }
  0x38   :  { %592 = vst [vmem:[%s1867_s1 + $0x630] sm:$0xff] %v1012_v3  ;;  %593 = vst [vmem:[%s1867_s1 + $0x6b0] sm:$0xff] %v1012_v3 }
  0x39   :  { %594 = vst [vmem:[%s1867_s1 + $0x730] sm:$0xff] %v1012_v3  ;;  %595 = vst [vmem:[%s1867_s1 + $0x7b0] sm:$0xff] %v1012_v3 }
  0x3a   :  { %597 = vst [vmem:[%s1867_s1 + $0x40] sm:$0xff] %v1017_v4  ;;  %598 = vst [vmem:[%s1867_s1 + $0xc0] sm:$0xff] %v1017_v4 }
  0x3b   :  { %599 = vst [vmem:[%s1867_s1 + $0x140] sm:$0xff] %v1017_v4  ;;  %600 = vst [vmem:[%s1867_s1 + $0x1c0] sm:$0xff] %v1017_v4 }
  0x3c   :  { %601 = vst [vmem:[%s1867_s1 + $0x240] sm:$0xff] %v1017_v4  ;;  %602 = vst [vmem:[%s1867_s1 + $0x2c0] sm:$0xff] %v1017_v4 }
  0x3d   :  { %603 = vst [vmem:[%s1867_s1 + $0x340] sm:$0xff] %v1017_v4  ;;  %604 = vst [vmem:[%s1867_s1 + $0x3c0] sm:$0xff] %v1017_v4 }
  0x3e   :  { %605 = vst [vmem:[%s1867_s1 + $0x440] sm:$0xff] %v1017_v4  ;;  %606 = vst [vmem:[%s1867_s1 + $0x4c0] sm:$0xff] %v1017_v4 }
  0x3f   :  { %607 = vst [vmem:[%s1867_s1 + $0x540] sm:$0xff] %v1017_v4  ;;  %608 = vst [vmem:[%s1867_s1 + $0x5c0] sm:$0xff] %v1017_v4 }
  0x40   :  { %609 = vst [vmem:[%s1867_s1 + $0x640] sm:$0xff] %v1017_v4  ;;  %610 = vst [vmem:[%s1867_s1 + $0x6c0] sm:$0xff] %v1017_v4 }
  0x41   :  { %611 = vst [vmem:[%s1867_s1 + $0x740] sm:$0xff] %v1017_v4  ;;  %612 = vst [vmem:[%s1867_s1 + $0x7c0] sm:$0xff] %v1017_v4 }
  0x42   :  { %614 = vst [vmem:[%s1867_s1 + $0x50] sm:$0xff] %v1022_v5  ;;  %615 = vst [vmem:[%s1867_s1 + $0xd0] sm:$0xff] %v1022_v5 }
  0x43   :  { %616 = vst [vmem:[%s1867_s1 + $0x150] sm:$0xff] %v1022_v5  ;;  %617 = vst [vmem:[%s1867_s1 + $0x1d0] sm:$0xff] %v1022_v5 }
  0x44   :  { %618 = vst [vmem:[%s1867_s1 + $0x250] sm:$0xff] %v1022_v5  ;;  %619 = vst [vmem:[%s1867_s1 + $0x2d0] sm:$0xff] %v1022_v5 }
  0x45   :  { %620 = vst [vmem:[%s1867_s1 + $0x350] sm:$0xff] %v1022_v5  ;;  %621 = vst [vmem:[%s1867_s1 + $0x3d0] sm:$0xff] %v1022_v5 }
  0x46   :  { %622 = vst [vmem:[%s1867_s1 + $0x450] sm:$0xff] %v1022_v5  ;;  %623 = vst [vmem:[%s1867_s1 + $0x4d0] sm:$0xff] %v1022_v5 }
  0x47   :  { %624 = vst [vmem:[%s1867_s1 + $0x550] sm:$0xff] %v1022_v5  ;;  %625 = vst [vmem:[%s1867_s1 + $0x5d0] sm:$0xff] %v1022_v5 }
  0x48   :  { %626 = vst [vmem:[%s1867_s1 + $0x650] sm:$0xff] %v1022_v5  ;;  %627 = vst [vmem:[%s1867_s1 + $0x6d0] sm:$0xff] %v1022_v5 }
  0x49   :  { %628 = vst [vmem:[%s1867_s1 + $0x750] sm:$0xff] %v1022_v5  ;;  %629 = vst [vmem:[%s1867_s1 + $0x7d0] sm:$0xff] %v1022_v5 }
  0x4a   :  { %712 = vst [vmem:[%s1867_s1 + $0x38] sm:$0xff] %v1012_v3  ;;  %713 = vst [vmem:[%s1867_s1 + $0xb8] sm:$0xff] %v1012_v3 }
  0x4b   :  { %714 = vst [vmem:[%s1867_s1 + $0x138] sm:$0xff] %v1012_v3  ;;  %715 = vst [vmem:[%s1867_s1 + $0x1b8] sm:$0xff] %v1012_v3 }
  0x4c   :  { %716 = vst [vmem:[%s1867_s1 + $0x238] sm:$0xff] %v1012_v3  ;;  %717 = vst [vmem:[%s1867_s1 + $0x2b8] sm:$0xff] %v1012_v3 }
  0x4d   :  { %718 = vst [vmem:[%s1867_s1 + $0x338] sm:$0xff] %v1012_v3  ;;  %719 = vst [vmem:[%s1867_s1 + $0x3b8] sm:$0xff] %v1012_v3 }
  0x4e   :  { %720 = vst [vmem:[%s1867_s1 + $0x438] sm:$0xff] %v1012_v3  ;;  %721 = vst [vmem:[%s1867_s1 + $0x4b8] sm:$0xff] %v1012_v3 }
  0x4f   :  { %722 = vst [vmem:[%s1867_s1 + $0x538] sm:$0xff] %v1012_v3  ;;  %723 = vst [vmem:[%s1867_s1 + $0x5b8] sm:$0xff] %v1012_v3 }
  0x50   :  { %724 = vst [vmem:[%s1867_s1 + $0x638] sm:$0xff] %v1012_v3  ;;  %725 = vst [vmem:[%s1867_s1 + $0x6b8] sm:$0xff] %v1012_v3 }
  0x51   :  { %726 = vst [vmem:[%s1867_s1 + $0x738] sm:$0xff] %v1012_v3  ;;  %727 = vst [vmem:[%s1867_s1 + $0x7b8] sm:$0xff] %v1012_v3 }
  0x52   :  { %728 = vst [vmem:[%s1867_s1 + $0x48] sm:$0xff] %v1017_v4  ;;  %729 = vst [vmem:[%s1867_s1 + $0xc8] sm:$0xff] %v1017_v4 }
  0x53   :  { %730 = vst [vmem:[%s1867_s1 + $0x148] sm:$0xff] %v1017_v4  ;;  %731 = vst [vmem:[%s1867_s1 + $0x1c8] sm:$0xff] %v1017_v4 }
  0x54   :  { %732 = vst [vmem:[%s1867_s1 + $0x248] sm:$0xff] %v1017_v4  ;;  %733 = vst [vmem:[%s1867_s1 + $0x2c8] sm:$0xff] %v1017_v4 }
  0x55   :  { %734 = vst [vmem:[%s1867_s1 + $0x348] sm:$0xff] %v1017_v4  ;;  %735 = vst [vmem:[%s1867_s1 + $0x3c8] sm:$0xff] %v1017_v4 }
  0x56   :  { %736 = vst [vmem:[%s1867_s1 + $0x448] sm:$0xff] %v1017_v4  ;;  %737 = vst [vmem:[%s1867_s1 + $0x4c8] sm:$0xff] %v1017_v4 }
  0x57   :  { %738 = vst [vmem:[%s1867_s1 + $0x548] sm:$0xff] %v1017_v4  ;;  %739 = vst [vmem:[%s1867_s1 + $0x5c8] sm:$0xff] %v1017_v4 }
  0x58   :  { %740 = vst [vmem:[%s1867_s1 + $0x648] sm:$0xff] %v1017_v4  ;;  %741 = vst [vmem:[%s1867_s1 + $0x6c8] sm:$0xff] %v1017_v4 }
  0x59   :  { %742 = vst [vmem:[%s1867_s1 + $0x748] sm:$0xff] %v1017_v4  ;;  %743 = vst [vmem:[%s1867_s1 + $0x7c8] sm:$0xff] %v1017_v4 }
  0x5a   :  { %744 = vst [vmem:[%s1867_s1 + $0x58] sm:$0xff] %v1022_v5  ;;  %745 = vst [vmem:[%s1867_s1 + $0xd8] sm:$0xff] %v1022_v5 }
  0x5b   :  { %746 = vst [vmem:[%s1867_s1 + $0x158] sm:$0xff] %v1022_v5  ;;  %747 = vst [vmem:[%s1867_s1 + $0x1d8] sm:$0xff] %v1022_v5 }
  0x5c   :  { %748 = vst [vmem:[%s1867_s1 + $0x258] sm:$0xff] %v1022_v5  ;;  %749 = vst [vmem:[%s1867_s1 + $0x2d8] sm:$0xff] %v1022_v5 }
  0x5d   :  { %750 = vst [vmem:[%s1867_s1 + $0x358] sm:$0xff] %v1022_v5  ;;  %751 = vst [vmem:[%s1867_s1 + $0x3d8] sm:$0xff] %v1022_v5 }
  0x5e   :  { %752 = vst [vmem:[%s1867_s1 + $0x458] sm:$0xff] %v1022_v5  ;;  %753 = vst [vmem:[%s1867_s1 + $0x4d8] sm:$0xff] %v1022_v5 }
  0x5f   :  { %754 = vst [vmem:[%s1867_s1 + $0x558] sm:$0xff] %v1022_v5  ;;  %755 = vst [vmem:[%s1867_s1 + $0x5d8] sm:$0xff] %v1022_v5 }
  0x60   :  { %756 = vst [vmem:[%s1867_s1 + $0x658] sm:$0xff] %v1022_v5  ;;  %757 = vst [vmem:[%s1867_s1 + $0x6d8] sm:$0xff] %v1022_v5 }
  0x61   :  { %758 = vst [vmem:[%s1867_s1 + $0x758] sm:$0xff] %v1022_v5  ;;  %759 = vst [vmem:[%s1867_s1 + $0x7d8] sm:$0xff] %v1022_v5 }
  0x62   :  { %631 = vst [vmem:[%s1867_s1 + $0x60] sm:$0xff] %v1411_v6  ;;  %632 = vst [vmem:[%s1867_s1 + $0xe0] sm:$0xff] %v1411_v6 }
  0x63   :  { %633 = vst [vmem:[%s1867_s1 + $0x160] sm:$0xff] %v1411_v6  ;;  %634 = vst [vmem:[%s1867_s1 + $0x1e0] sm:$0xff] %v1411_v6 }
  0x64   :  { %635 = vst [vmem:[%s1867_s1 + $0x260] sm:$0xff] %v1411_v6  ;;  %636 = vst [vmem:[%s1867_s1 + $0x2e0] sm:$0xff] %v1411_v6 }
  0x65   :  { %637 = vst [vmem:[%s1867_s1 + $0x360] sm:$0xff] %v1411_v6  ;;  %638 = vst [vmem:[%s1867_s1 + $0x3e0] sm:$0xff] %v1411_v6 }
  0x66   :  { %639 = vst [vmem:[%s1867_s1 + $0x460] sm:$0xff] %v1411_v6  ;;  %640 = vst [vmem:[%s1867_s1 + $0x4e0] sm:$0xff] %v1411_v6 }
  0x67   :  { %641 = vst [vmem:[%s1867_s1 + $0x560] sm:$0xff] %v1411_v6  ;;  %642 = vst [vmem:[%s1867_s1 + $0x5e0] sm:$0xff] %v1411_v6 }
  0x68   :  { %643 = vst [vmem:[%s1867_s1 + $0x660] sm:$0xff] %v1411_v6  ;;  %644 = vst [vmem:[%s1867_s1 + $0x6e0] sm:$0xff] %v1411_v6 }
  0x69   :  { %645 = vst [vmem:[%s1867_s1 + $0x760] sm:$0xff] %v1411_v6  ;;  %646 = vst [vmem:[%s1867_s1 + $0x7e0] sm:$0xff] %v1411_v6 }
  0x6a   :  { %648 = vst [vmem:[%s1867_s1 + $0x70] sm:$0xff] %v1416_v7  ;;  %649 = vst [vmem:[%s1867_s1 + $0xf0] sm:$0xff] %v1416_v7 }
  0x6b   :  { %650 = vst [vmem:[%s1867_s1 + $0x170] sm:$0xff] %v1416_v7  ;;  %651 = vst [vmem:[%s1867_s1 + $0x1f0] sm:$0xff] %v1416_v7 }
  0x6c   :  { %652 = vst [vmem:[%s1867_s1 + $0x270] sm:$0xff] %v1416_v7  ;;  %653 = vst [vmem:[%s1867_s1 + $0x2f0] sm:$0xff] %v1416_v7 }
  0x6d   :  { %654 = vst [vmem:[%s1867_s1 + $0x370] sm:$0xff] %v1416_v7  ;;  %655 = vst [vmem:[%s1867_s1 + $0x3f0] sm:$0xff] %v1416_v7 }
  0x6e   :  { %656 = vst [vmem:[%s1867_s1 + $0x470] sm:$0xff] %v1416_v7  ;;  %657 = vst [vmem:[%s1867_s1 + $0x4f0] sm:$0xff] %v1416_v7 }
  0x6f   :  { %658 = vst [vmem:[%s1867_s1 + $0x570] sm:$0xff] %v1416_v7  ;;  %659 = vst [vmem:[%s1867_s1 + $0x5f0] sm:$0xff] %v1416_v7 }
  0x70   :  { %660 = vst [vmem:[%s1867_s1 + $0x670] sm:$0xff] %v1416_v7  ;;  %661 = vst [vmem:[%s1867_s1 + $0x6f0] sm:$0xff] %v1416_v7 }
  0x71   :  { %662 = vst [vmem:[%s1867_s1 + $0x770] sm:$0xff] %v1416_v7  ;;  %663 = vst [vmem:[%s1867_s1 + $0x7f0] sm:$0xff] %v1416_v7 }
  0x72   :  { %760 = vst [vmem:[%s1867_s1 + $0x68] sm:$0xff] %v1411_v6  ;;  %761 = vst [vmem:[%s1867_s1 + $0xe8] sm:$0xff] %v1411_v6 }
  0x73   :  { %762 = vst [vmem:[%s1867_s1 + $0x168] sm:$0xff] %v1411_v6  ;;  %763 = vst [vmem:[%s1867_s1 + $0x1e8] sm:$0xff] %v1411_v6 }
  0x74   :  { %764 = vst [vmem:[%s1867_s1 + $0x268] sm:$0xff] %v1411_v6  ;;  %765 = vst [vmem:[%s1867_s1 + $0x2e8] sm:$0xff] %v1411_v6 }
  0x75   :  { %766 = vst [vmem:[%s1867_s1 + $0x368] sm:$0xff] %v1411_v6  ;;  %767 = vst [vmem:[%s1867_s1 + $0x3e8] sm:$0xff] %v1411_v6 }
  0x76   :  { %768 = vst [vmem:[%s1867_s1 + $0x468] sm:$0xff] %v1411_v6  ;;  %769 = vst [vmem:[%s1867_s1 + $0x4e8] sm:$0xff] %v1411_v6 }
  0x77   :  { %770 = vst [vmem:[%s1867_s1 + $0x568] sm:$0xff] %v1411_v6  ;;  %771 = vst [vmem:[%s1867_s1 + $0x5e8] sm:$0xff] %v1411_v6 }
  0x78   :  { %772 = vst [vmem:[%s1867_s1 + $0x668] sm:$0xff] %v1411_v6  ;;  %773 = vst [vmem:[%s1867_s1 + $0x6e8] sm:$0xff] %v1411_v6 }
  0x79   :  { %774 = vst [vmem:[%s1867_s1 + $0x768] sm:$0xff] %v1411_v6  ;;  %775 = vst [vmem:[%s1867_s1 + $0x7e8] sm:$0xff] %v1411_v6 }
  0x7a   :  { %776 = vst [vmem:[%s1867_s1 + $0x78] sm:$0xff] %v1416_v7  ;;  %777 = vst [vmem:[%s1867_s1 + $0xf8] sm:$0xff] %v1416_v7 }
  0x7b   :  { %778 = vst [vmem:[%s1867_s1 + $0x178] sm:$0xff] %v1416_v7  ;;  %779 = vst [vmem:[%s1867_s1 + $0x1f8] sm:$0xff] %v1416_v7 }
  0x7c   :  { %780 = vst [vmem:[%s1867_s1 + $0x278] sm:$0xff] %v1416_v7  ;;  %781 = vst [vmem:[%s1867_s1 + $0x2f8] sm:$0xff] %v1416_v7 }
  0x7d   :  { %782 = vst [vmem:[%s1867_s1 + $0x378] sm:$0xff] %v1416_v7  ;;  %783 = vst [vmem:[%s1867_s1 + $0x3f8] sm:$0xff] %v1416_v7 }
  0x7e   :  { %784 = vst [vmem:[%s1867_s1 + $0x478] sm:$0xff] %v1416_v7  ;;  %785 = vst [vmem:[%s1867_s1 + $0x4f8] sm:$0xff] %v1416_v7 }
  0x7f   :  { %786 = vst [vmem:[%s1867_s1 + $0x578] sm:$0xff] %v1416_v7  ;;  %787 = vst [vmem:[%s1867_s1 + $0x5f8] sm:$0xff] %v1416_v7 }
  0x80   :  { %788 = vst [vmem:[%s1867_s1 + $0x678] sm:$0xff] %v1416_v7  ;;  %789 = vst [vmem:[%s1867_s1 + $0x6f8] sm:$0xff] %v1416_v7 }
  0x81   :  { %790 = vst [vmem:[%s1867_s1 + $0x778] sm:$0xff] %v1416_v7  ;;  %791 = vst [vmem:[%s1867_s1 + $0x7f8] sm:$0xff] %v1416_v7 }

// kernel: double_convertible_style_block.1
= control target key start
LH: loop header
LB: loop body
LE: loop exit
PB: predicated region body
PF: predicated region fallthrough
CT: control target
= control target key end

     0   :  { %v1896_v0 = vmov 0.0|0.0   ;;  %vm1897_vm0 = vmmov 0   ;;  %v1898_v3 = vmov 0.0   ;;  %vm32_vm1 = vcmask 130048   ;;  %s2401_s1 = inlined_call_operand.vmem [shape: f32[17,64], index: 1, kind: input, shape index: {}]   ;;  %s2402_s2 = inlined_call_operand.vmem [shape: f32[216,128], index: 2, kind: input, shape index: {}]   ;;  %s2403_s0 = inlined_call_operand.vmem [shape: f32[2,16], index: 0, kind: input, shape index: {}]   ;;  %s2404_s4 = inlined_call_operand.vmem [shape: bf16[2,64,384], index: 4, kind: input, shape index: {}]   ;;  %s2405_s3 = inlined_call_operand.vmem [shape: f32[2,24,64], index: 3, kind: input, shape index: {}]   ;;  %s2406_s5 = inlined_call_operand.vmem [shape: bf16[128,384], index: 5, kind: input, shape index: {}]   ;;  %s2407_s6 = inlined_call_operand.vmem [shape: f32[2,16,128], index: 6, kind: output, shape index: {}]  }
   0x1   :  { %1741 = vmatprep.subr.bf16.mxu0 %v1896_v0  ;;  %v25_v1 = vld [vmem:[%s2401_s1] sm:$0xff]  ;;  %v26_v2 = vld [vmem:[%s2401_s1 + $0x8] sm:$0xff]  ;;  %1609 = vmatprep.mubr.msk.f32.mxu0 %vm1897_vm0, %v1898_v3  ;;  %734 = vst [vmem:[#allocation2] sm:$0x1] %v1898_v3  ;;  %735 = vst [vmem:[#allocation2 + $0x18] sm:$0x1] %v1898_v3  ;;  %v366_v48 = vlaneseq }
   0x2   :  { %736 = vst [vmem:[#allocation2 + $0x11] sm:$0x7f] %v1898_v3  ;;  %737 = vst [vmem:[#allocation2 + $0x29] sm:$0x7f] %v1898_v3  ;;  %v1742_v4 = vpack.c.bf16 %v26_v2, %v25_v1  ;;  %v190_v5 = vld [vmem:[%s2402_s2] sm:$0xff]  ;;  %v191_v6 = vld [vmem:[%s2402_s2 + $0x8] sm:$0xff]  ;;  %1744 = vmatprep.subr.bf16.mxu1 %v1896_v0  ;;  %1628 = vmatprep.mubr.msk.f32.mxu1 %vm1897_vm0, %v1898_v3 }
   0x3   :  { %v24_v7 = vld [vmem:[%s2403_s0] sm:$0x3]  ;;  %v1757_v8 = vpack.c.bf16 %v191_v6, %v190_v5  ;;  %v107_v9 = vld [vmem:[%s2402_s2 + $0x18] sm:$0xff]  ;;  %v109_v14 = vld [vmem:[%s2402_s2 + $0x28] sm:$0xff]  ;;  %v1899_v46 = vmov 1966171168  }
   0x4   :  { %1743 = vmatpush3.bf16.msra.mxu0 %v1742_v4  ;;  %v268_v10 = vld [vmem:[%s2402_s2 + $0x58] sm:$0xff]  ;;  %v269_v11 = vld [vmem:[%s2402_s2 + $0x60] sm:$0xff]  ;;  %v110_v15 = vld [vmem:[%s2402_s2 + $0x30] sm:$0xff]  ;;  %v364_v47 = vunpack.c.l.s4 %v1899_v46  ;;  %v367_v50 = vshrl.u32 %v366_v48, 7  ;;  %vm115_vm2 = vcmask 523264   ;;  %v1900_v2 = vmov 0  }
   0x5   :  { %1756 = vmatprep.subr.bf16.mxu0 %v1896_v0  ;;  %v108_v12 = vld [vmem:[%s2402_s2 + $0x20] sm:$0xff]  ;;  %v1760_v16 = vpack.c.bf16 %v269_v11, %v268_v10  ;;  %v270_v17 = vld [vmem:[%s2402_s2 + $0x68] sm:$0xff]  ;;  %v271_v18 = vld [vmem:[%s2402_s2 + $0x70] sm:$0xff]  ;;  %v1748_v19 = vpack.c.bf16 %v110_v15, %v109_v14  ;;  %vm617_vm3 = vcmask 1046528   ;;  %vm642_vm4 = vcmask 1045504  }
   0x6   :  { %v1745_v13 = vpack.c.bf16 %v108_v12, %v107_v9  ;;  %v111_v20 = vld [vmem:[%s2402_s2 + $0x38] sm:$0xff]  ;;  %v112_v21 = vld [vmem:[%s2402_s2 + $0x40] sm:$0xff]  ;;  %v1763_v22 = vpack.c.bf16 %v271_v18, %v270_v17  ;;  %v274_v27 = vld [vmem:[%s2402_s2 + $0x88] sm:$0xff]  ;;  %v365_v49 = vunpack.c.0.s8 %v364_v47  ;;  %v2081_v5 = vsub.s32 0, %v367_v50 }
   0x7   :  { %1610 = vmatmul.mubr.msk.f32.vlgmr.msra.gmra.mrb[0].mxu0 %vm32_vm1, %v24_v7  ;;  %v272_v23 = vld [vmem:[%s2402_s2 + $0x78] sm:$0xff]  ;;  %v273_v24 = vld [vmem:[%s2402_s2 + $0x80] sm:$0xff]  ;;  %v1751_v25 = vpack.c.bf16 %v112_v21, %v111_v20  ;;  %v275_v28 = vld [vmem:[%s2402_s2 + $0x90] sm:$0xff] }
   0x8   :  { %1758 = vmatpush3.bf16.msra.mxu0 %v1757_v8  ;;  %1635 = vmatprep.mubr.msk.f32.mxu0 %vm1897_vm0, %v1898_v3  ;;  %v1766_v26 = vpack.c.bf16 %v273_v24, %v272_v23  ;;  %v1769_v29 = vpack.c.bf16 %v275_v28, %v274_v27  ;;  %v276_v30 = vld [vmem:[%s2402_s2 + $0x98] sm:$0xff]  ;;  %v277_v31 = vld [vmem:[%s2402_s2 + $0xa0] sm:$0xff]  ;;  %v278_v33 = vld [vmem:[%s2402_s2 + $0xa8] sm:$0xff]  ;;  %v2058_v52 = vsub.s32 %v365_v49, %v367_v50 }
   0x9   :  { %1759 = vmatprep.subr.bf16.mxu0 %v1896_v0  ;;  %1746 = vmatpush3.bf16.msra.mxu1 %v1745_v13  ;;  %v1772_v32 = vpack.c.bf16 %v277_v31, %v276_v30  ;;  %v279_v34 = vld [vmem:[%s2402_s2 + $0xb0] sm:$0xff]  ;;  %v113_v36 = vld [vmem:[%s2402_s2 + $0x48] sm:$0xff]  ;;  %v280_v38 = vld [vmem:[%s2402_s2 + $0xb8] sm:$0xff] }
   0xa   :  { %1747 = vmatprep.subr.bf16.mxu1 %v1896_v0  ;;  %v1775_v35 = vpack.c.bf16 %v279_v34, %v278_v33  ;;  %v114_v37 = vld [vmem:[%s2402_s2 + $0x50] sm:$0xff]  ;;  %v281_v40 = vld [vmem:[%s2402_s2 + $0xc0] sm:$0xff]  ;;  %v282_v43 = vld [vmem:[%s2402_s2 + $0xc8] sm:$0xff] }
   0xb   :  { %1636 = vmatmul.mubr.msk.f32.vlgmr.msra.gmra.mrb[2].mxu0 %vm32_vm1, %v24_v7  ;;  %v1754_v39 = vpack.c.bf16 %v114_v37, %v113_v36  ;;  %v1778_v41 = vpack.c.bf16 %v281_v40, %v280_v38  ;;  %v1798_v42 = vld [vmem:[%s2404_s4 + $0x4] ss:$12 sps:$4 sm:$0xff]   ;;  %v1796_v57 = vld [vmem:[%s2404_s4] ss:$12 sps:$4 sm:$0xff]   ;;  %v1801_v60 = vld [vmem:[%s2404_s4 + $0x1c] ss:$12 sps:$4 sm:$0xff]  }
   0xc   :  { %1761 = vmatpush3.bf16.msra.mxu0 %v1760_v16  ;;  %1670 = vmatprep.mubr.msk.f32.mxu0 %vm1897_vm0, %v1898_v3  ;;  %v283_v44 = vld [vmem:[%s2402_s2 + $0xd0] sm:$0xff]  ;;  %v1806_v9 = vld [vmem:[%s2404_s4 + $0x20] ss:$12 sps:$4 sm:$0xff]   ;;  %v1810_v16 = vld [vmem:[%s2404_s4 + $0x38] ss:$12 sps:$4 sm:$0xff]  }
   0xd   :  { %1762 = vmatprep.subr.bf16.mxu0 %v1896_v0  ;;  %1749 = vmatpush3.bf16.msra.mxu1 %v1748_v19  ;;  %v1781_v45 = vpack.c.bf16 %v283_v44, %v282_v43  ;;  %v1466_v51 = vld [vmem:[%s2401_s1 + $0x10] ss:$0 sm:$0xff]  ;;  %v1802_v1 = vld [vmem:[%s2404_s4 + $0x8] ss:$12 sps:$4 sm:$0xff]   ;;  %v1809_v12 = vld [vmem:[%s2404_s4 + $0x4c] ss:$12 sps:$4 sm:$0xff]  }
   0xe   :  { %1750 = vmatprep.subr.bf16.mxu1 %v1896_v0  ;;  %v1469_v56 = vld [vmem:[%s2402_s2 + $0x10] ss:$0 sm:$0xff]  ;;  %v1805_v7 = vld [vmem:[%s2404_s4 + $0x34] ss:$12 sps:$4 sm:$0xff]   ;;  %v2107_v14 = vld [vmem:[%s2405_s3 + $0x8] sm:$0xff] }
   0xf   :  { %v1803_v8 = vld [vmem:[%s2404_s4 + $0x30] ss:$12 sps:$4 sm:$0xff]   ;;  %v2102_v13 = vld [vmem:[%s2405_s3] sm:$0xff]  ;;  %v1807_v15 = vld [vmem:[%s2404_s4 + $0x48] ss:$12 sps:$4 sm:$0xff]  }
  0x10   :  { %1764 = vmatpush3.bf16.msra.mxu0 %v1763_v22  ;;  %v1811_v20 = vld [vmem:[%s2404_s4 + $0x50] ss:$12 sps:$4 sm:$0xff]   ;;  %v2147_v28 = vld [vmem:[%s2405_s3 + $0x20] sm:$0xff]  ;;  %v1824_v43 = vld [vmem:[%s2406_s5 + $0x48] ss:$12 sps:$4 sm:$0xff]  }
  0x11   :  { %1765 = vmatprep.subr.bf16.mxu0 %v1896_v0  ;;  %1752 = vmatpush3.bf16.msra.mxu1 %v1751_v25  ;;  %v2129_v23 = vld [vmem:[%s2405_s3 + $0x18] sm:$0xff]  ;;  %v2136_v24 = vld [vmem:[%s2405_s3 + $0x10] sm:$0xff]  ;;  %v1812_v34 = vld [vmem:[%s2406_s5] ss:$12 sps:$4 sm:$0xff]  }
  0x12   :  { %1753 = vmatprep.subr.bf16.mxu1 %v1896_v0  ;;  %v1814_v33 = vld [vmem:[%s2406_s5 + $0x4] ss:$12 sps:$4 sm:$0xff]   ;;  %v1818_v36 = vld [vmem:[%s2406_s5 + $0x1c] ss:$12 sps:$4 sm:$0xff]   ;;  %v1819_v38 = vld [vmem:[%s2406_s5 + $0x20] ss:$12 sps:$4 sm:$0xff]  }
  0x13   :  { %v1816_v37 = vld [vmem:[%s2406_s5 + $0x18] ss:$12 sps:$4 sm:$0xff]   ;;  %v1820_v40 = vld [vmem:[%s2406_s5 + $0x30] ss:$12 sps:$4 sm:$0xff]   ;;  %v1828_v46 = vld [vmem:[%s2406_s5 + $0x60] ss:$12 sps:$4 sm:$0xff]  }
  0x14   :  { %1767 = vmatpush3.bf16.msra.mxu0 %v1766_v26  ;;  %v1827_v44 = vld [vmem:[%s2406_s5 + $0x50] ss:$12 sps:$4 sm:$0xff]   ;;  %v1831_v47 = vld [vmem:[%s2406_s5 + $0x68] ss:$12 sps:$4 sm:$0xff]   ;;  %v1832_v49 = vld [vmem:[%s2406_s5 + $0x78] ss:$12 sps:$4 sm:$0xff]  }
  0x15   :  { %1768 = vmatprep.subr.bf16.mxu0 %v1896_v0  ;;  %1755 = vmatpush3.bf16.msra.mxu1 %v1754_v39  ;;  %v1822_v39 = vld [vmem:[%s2406_s5 + $0x34] ss:$12 sps:$4 sm:$0xff]   ;;  %v1834_v48 = vld [vmem:[%s2406_s5 + $0x7c] ss:$12 sps:$4 sm:$0xff]  }
  0x16   :  { %493 = vmatprep.subr.bf16.mxu1 %v1798_v42  ;;  %v1826_v42 = vld [vmem:[%s2406_s5 + $0x4c] ss:$12 sps:$4 sm:$0xff]  }
  0x17   :  { %v1835_v50 = vld [vmem:[%s2406_s5 + $0x80] ss:$12 sps:$4 sm:$0xff]  }
  0x18   :  { %1770 = vmatpush3.bf16.msra.mxu0 %v1769_v29  ;;  %v2152_v29 = vld [vmem:[%s2405_s3 + $0x28] sm:$0xff] }
  0x19   :  { %1771 = vmatprep.subr.bf16.mxu0 %v1896_v0 }
  0x1c   :  { %1773 = vmatpush3.bf16.msra.mxu0 %v1772_v32 }
  0x1d   :  { %1774 = vmatprep.subr.bf16.mxu0 %v1896_v0 }
  0x20   :  { %1776 = vmatpush3.bf16.msra.mxu0 %v1775_v35  ;;  %v1815_v35 = vld [vmem:[%s2406_s5 + $0x8] ss:$12 sps:$4 sm:$0xff]  }
  0x21   :  { %1777 = vmatprep.subr.bf16.mxu0 %v1896_v0 }
  0x24   :  { %1779 = vmatpush3.bf16.msra.mxu0 %v1778_v41  ;;  %v1823_v41 = vld [vmem:[%s2406_s5 + $0x38] ss:$12 sps:$4 sm:$0xff]  }
  0x25   :  { %1780 = vmatprep.subr.bf16.mxu0 %v1896_v0  ;;  %v1799_v0 = vld [vmem:[%s2404_s4 + $0x18] ss:$12 sps:$4 sm:$0xff]  }
  0x28   :  { %1782 = vmatpush3.bf16.msra.mxu0 %v1781_v45  ;;  %v1830_v45 = vld [vmem:[%s2406_s5 + $0x64] ss:$12 sps:$4 sm:$0xff]  }
  0x29   :  { %1673 = vmatprep.subr.bf16.mxu0 %v1898_v3 }
  0xda   :  { %v102_v53 = vpop.f32.mrb[0].mxu0 }
  0xdb   :  { %v103_v54 = vadd.f32 %v1466_v51, %v102_v53  ;;  %v1611_v55 = vpop.f32.mrb[1].mxu0  ;;  %v1838_v51 = vld [vmem:[%s2406_s5 + $0x94] ss:$12 sps:$4 sm:$0xff]   ;;  %v1836_v53 = vld [vmem:[%s2406_s5 + $0x90] ss:$12 sps:$4 sm:$0xff]  }
  0xdc   :  { %v1842_v55 = vld [vmem:[%s2406_s5 + $0xac] ss:$12 sps:$4 sm:$0xff]  }
  0xdd   :  { %v106_v58 = vmul.f32 %v103_v54, %v103_v54  ;;  %v369_v59 = vrot.slane %v103_v54, %v2058_v52  ;;  %v1839_v54 = vld [vmem:[%s2406_s5 + $0x98] ss:$12 sps:$4 sm:$0xff]  }
  0xde   :  { %v263_v61 = vpop.f32.mrb[2].mxu0 }
  0xdf   :  { %v2070_v62 = vadd.f32 %v1469_v56, %v263_v61  ;;  %1629 = vmatmul.mubr.msk.f32.vlgmr.msra.gmra.mrb[0].mxu1 %vm115_vm2, %v106_v58  ;;  %v1637_v63 = vpop.f32.mrb[3].mxu0  ;;  %v377_v4 = vrot.slane %v369_v59, %v2058_v52  ;;  %v370_v10 = vcombine.high %v369_v59, %v369_v59  ;;  %v1840_v56 = vld [vmem:[%s2406_s5 + $0xa8] ss:$12 sps:$4 sm:$0xff]   ;;  %v1846_v58 = vld [vmem:[%s2404_s4 + $0x64] ss:$12 sps:$4 sm:$0xff]  }
  0xe0   :  { %494 = vmatpush1.bf16.msra.mxu1 %v1796_v57  ;;  %525 = vmatprep.mubr.bf16.mxu1 %v1900_v2  ;;  %v1843_v57 = vld [vmem:[%s2406_s5 + $0xb0] ss:$12 sps:$4 sm:$0xff]  }
  0xe1   :  { %v267_v6 = vmul.f32 %v2070_v62, %v2070_v62  ;;  %495 = vmatprep.subr.bf16.mxu1 %v1801_v60  ;;  %v388_v11 = vrot.slane %v377_v4, %v2081_v5  ;;  %v384_v17 = vrot.slane %v370_v10, %v2058_v52 }
  0xe3   :  { %1671 = vmatmul.mubr.f32.vlgmr.msra.gmra.mrb[4].mxu0 %v267_v6  ;;  %v395_v18 = vmul.f32 %v388_v11, %v2102_v13  ;;  %v396_v19 = vmul.f32 %v388_v11, %v2107_v14  ;;  %v392_v21 = vrot.slane %v384_v17, %v2081_v5  ;;  %v397_v26 = vmul.f32 %v388_v11, %v2136_v24 }
  0xe4   :  { %496 = vmatpush1.bf16.msra.mxu1 %v1799_v0  ;;  %1674 = vmatpush3.bf16.msra.mxu0 %v1802_v1 }
  0xe5   :  { %497 = vmatprep.subr.bf16.mxu1 %v1805_v7  ;;  %1675 = vmatprep.subr.bf16.mxu0 %v1898_v3  ;;  %v401_v22 = vpack.c.bf16 %v396_v19, %v395_v18  ;;  %v398_v25 = vmul.f32 %v392_v21, %v2129_v23  ;;  %v399_v30 = vmul.f32 %v392_v21, %v2147_v28 }
  0xe6   :  { %1681 = vmatprep.mubr.msk.bf16.mxu0 %vm1897_vm0, %v1898_v3  ;;  %v400_v31 = vmul.f32 %v392_v21, %v2152_v29 }
  0xe7   :  { %v402_v27 = vpack.c.bf16 %v398_v25, %v397_v26 }
  0xe8   :  { %498 = vmatpush1.bf16.msra.mxu1 %v1803_v8  ;;  %1676 = vmatpush3.bf16.msra.mxu0 %v1806_v9  ;;  %v403_v32 = vpack.c.bf16 %v400_v31, %v399_v30 }
  0xe9   :  { %499 = vmatprep.subr.bf16.mxu1 %v1809_v12  ;;  %1677 = vmatprep.subr.bf16.mxu0 %v1898_v3 }
  0xec   :  { %500 = vmatpush1.bf16.msra.mxu1 %v1807_v15  ;;  %1678 = vmatpush3.bf16.msra.mxu0 %v1810_v16 }
  0xed   :  { %1679 = vmatprep.subr.bf16.mxu0 %v1898_v3  ;;  %948 = vmatprep.subr.bf16.mxu1 %v1814_v33 }
  0xef   :  { %1483 = vmatmul.mubr.msk.bf16.vlgmr.msra.gmra.mrb[4].mxu1 %vm115_vm2, %v401_v22 }
  0xf0   :  { %1680 = vmatpush3.bf16.msra.mxu0 %v1811_v20  ;;  %535 = vmatprep.mubr.bf16.mxu1 %v1900_v2 }
  0xf1   :  { %1693 = vmatprep.subr.bf16.mxu0 %v1898_v3  ;;  %949 = vmatpush1.bf16.msra.mxu1 %v1812_v34 }
  0xf2   :  { %950 = vmatprep.subr.bf16.mxu1 %v1818_v36 }
  0xf3   :  { %1682 = vmatmul.mubr.msk.bf16.vlgmr.msra.gmra.mrb[8].mxu0 %vm115_vm2, %v401_v22 }
  0xf4   :  { %1685 = vmatprep.mubr.msk.bf16.mxu0 %vm1897_vm0, %v1898_v3  ;;  %1694 = vmatpush3.bf16.msra.mxu0 %v1815_v35 }
  0xf5   :  { %1695 = vmatprep.subr.bf16.mxu0 %v1898_v3  ;;  %951 = vmatpush1.bf16.msra.mxu1 %v1816_v37 }
  0xf6   :  { %952 = vmatprep.subr.bf16.mxu1 %v1822_v39 }
  0xf7   :  { %1484 = vmatmul.mubr.msk.bf16.gmra.mrb[8].mxu1 %vm115_vm2, %v402_v27 }
  0xf8   :  { %544 = vmatprep.mubr.bf16.mxu1 %v1900_v2  ;;  %1696 = vmatpush3.bf16.msra.mxu0 %v1819_v38 }
  0xf9   :  { %1697 = vmatprep.subr.bf16.mxu0 %v1898_v3  ;;  %953 = vmatpush1.bf16.msra.mxu1 %v1820_v40 }
  0xfa   :  { %954 = vmatprep.subr.bf16.mxu1 %v1826_v42 }
  0xfb   :  { %1686 = vmatmul.mubr.msk.bf16.gmra.mrb[12].mxu0 %vm115_vm2, %v402_v27 }
  0xfc   :  { %1689 = vmatprep.mubr.msk.bf16.mxu0 %vm1897_vm0, %v1898_v3  ;;  %1698 = vmatpush3.bf16.msra.mxu0 %v1823_v41 }
  0xfd   :  { %1699 = vmatprep.subr.bf16.mxu0 %v1898_v3  ;;  %955 = vmatpush1.bf16.msra.mxu1 %v1824_v43 }
  0xfe   :  { %956 = vmatprep.subr.bf16.mxu1 %v1830_v45 }
  0xff   :  { %1485 = vmatmul.mubr.msk.bf16.gmra.mrb[12].mxu1 %vm115_vm2, %v403_v32 }
 0x100   :  { %980 = vmatprep.mubr.bf16.mxu1 %v1900_v2  ;;  %1700 = vmatpush3.bf16.msra.mxu0 %v1827_v44 }
 0x101   :  { %1701 = vmatprep.subr.bf16.mxu0 %v1898_v3  ;;  %957 = vmatpush1.bf16.msra.mxu1 %v1828_v46 }
 0x102   :  { %958 = vmatprep.subr.bf16.mxu1 %v1834_v48 }
 0x103   :  { %1690 = vmatmul.mubr.msk.bf16.gmra.mrb[16].mxu0 %vm115_vm2, %v403_v32 }
 0x104   :  { %1709 = vmatprep.mubr.msk.bf16.mxu0 %vm1897_vm0, %v1898_v3  ;;  %1702 = vmatpush3.bf16.msra.mxu0 %v1831_v47 }
 0x105   :  { %1703 = vmatprep.subr.bf16.mxu0 %v1898_v3  ;;  %959 = vmatpush1.bf16.msra.mxu1 %v1832_v49 }
 0x106   :  { %960 = vmatprep.subr.bf16.mxu1 %v1838_v51 }
 0x108   :  { %1704 = vmatpush3.bf16.msra.mxu0 %v1835_v50 }
 0x109   :  { %1705 = vmatprep.subr.bf16.mxu0 %v1898_v3  ;;  %961 = vmatpush1.bf16.msra.mxu1 %v1836_v53 }
 0x10a   :  { %962 = vmatprep.subr.bf16.mxu1 %v1842_v55 }
 0x10c   :  { %1706 = vmatpush3.bf16.msra.mxu0 %v1839_v54 }
 0x10d   :  { %1707 = vmatprep.subr.bf16.mxu0 %v1898_v3  ;;  %963 = vmatpush1.bf16.msra.mxu1 %v1840_v56 }
 0x10e   :  { %1280 = vmatprep.subr.bf16.mxu1 %v1846_v58 }
 0x110   :  { %1708 = vmatpush3.bf16.msra.mxu0 %v1843_v57 }
 0x111   :  { %1721 = vmatprep.subr.bf16.mxu0 %v1898_v3 }
 0x1b2   :  { %v185_v59 = vpop.f32.mrb[0].mxu1 }
 0x1b3   :  { %v186_v60 = vadd.f32 1e-08, %v185_v59  ;;  %v1630_v61 = vpop.f32.mrb[1].mxu1 }
 0x1b5   :  { %1860 = vrsqrt.f32 %v186_v60 }
 0x1b6   :  { %v2249_v63 = vpop.f32.mrb[4].mxu0 }
 0x1b7   :  { %v1672_v0 = vpop.f32.mrb[5].mxu0 }
 0x1bf   :  { %v1861_v1 = vpop.eup %1860 }
 0x1c0   :  { %v668_v7 = vrot.slane %v1861_v1, %v2058_v52 }
 0x1c2   :  { %v527_v4 = vpop.f32.mrb[4].mxu1  ;;  %v676_v18 = vrot.slane %v668_v7, %v2058_v52  ;;  %v669_v48 = vcombine.high %v668_v7, %v668_v7 }
 0x1c3   :  { %v529_v6 = vpop.f32.mrb[5].mxu1 }
 0x1c4   :  { %v531_v8 = vpop.f32.mrb[6].mxu1  ;;  %v618_v10 = vrot.slane %v529_v6, 1  ;;  %v687_v31 = vrot.slane %v676_v18, %v2081_v5  ;;  %v683_v60 = vrot.slane %v669_v48, %v2058_v52 }
 0x1c5   :  { %v533_v9 = vpop.f32.mrb[7].mxu1 }
 0x1c6   :  { %v619_v11 = vrot.slane %v533_v9, 1  ;;  %v588_v12 = vpop.f32.mrb[8].mxu0 }
 0x1c7   :  { %v1683_v15 = vpop.f32.mrb[9].mxu0  ;;  %v643_v20 = vrot.slane %v588_v12, 2 }
 0x1c8   :  { %v620_v16 = vsel %vm617_vm3, %v618_v10, %v619_v11  ;;  %v591_v17 = vpop.f32.mrb[10].mxu0 }
 0x1c9   :  { %v632_v19 = vadd.f32 %v620_v16, %v527_v4  ;;  %v644_v21 = vrot.slane %v591_v17, 2  ;;  %v1684_v22 = vpop.f32.mrb[11].mxu0  ;;  %v691_v16 = vrot.slane %v683_v60, %v2081_v5 }
 0x1ca   :  { %v537_v25 = vpop.f32.mrb[8].mxu1 }
 0x1cb   :  { %v645_v26 = vsel %vm642_vm4, %v643_v20, %v644_v21  ;;  %v538_v27 = vpop.f32.mrb[9].mxu1 }
 0x1cc   :  { %v657_v30 = vadd.f32 %v645_v26, %v632_v19  ;;  %v621_v32 = vrot.slane %v538_v27, 1  ;;  %v540_v33 = vpop.f32.mrb[10].mxu1 }
 0x1cd   :  { %v542_v34 = vpop.f32.mrb[11].mxu1 }
 0x1ce   :  { %v2256_v35 = vmul.f32 %v687_v31, %v657_v30  ;;  %v622_v36 = vsel %vm617_vm3, %v619_v11, %v621_v32  ;;  %v596_v37 = vpop.f32.mrb[12].mxu0  ;;  %v623_v50 = vrot.slane %v542_v34, 1 }
 0x1cf   :  { %v633_v38 = vadd.f32 %v622_v36, %v531_v8  ;;  %v646_v39 = vrot.slane %v596_v37, 2  ;;  %v1687_v40 = vpop.f32.mrb[13].mxu0  ;;  %v745_v37 = vrot.slane %v2070_v62, %v2058_v52 }
 0x1d0   :  { %v698_v41 = vmin.f32 %v2256_v35, 20.0  ;;  %v599_v42 = vpop.f32.mrb[14].mxu0 }
 0x1d1   :  { %v647_v43 = vsel %vm642_vm4, %v644_v21, %v646_v39  ;;  %v1688_v44 = vpop.f32.mrb[15].mxu0  ;;  %v648_v61 = vrot.slane %v599_v42, 2  ;;  %v753_v40 = vrot.slane %v745_v37, %v2058_v52 }
 0x1d2   :  { %v702_v45 = vmul.f32 1.442695, %v698_v41  ;;  %v658_v46 = vadd.f32 %v647_v43, %v633_v38  ;;  %v546_v47 = vpop.f32.mrb[12].mxu1 }
 0x1d3   :  { %v548_v49 = vpop.f32.mrb[13].mxu1 }
 0x1d4   :  { %1862 = vpow2.f32 %v702_v45  ;;  %v695_v51 = vmul.f32 %v687_v31, %v658_v46  ;;  %v624_v53 = vrot.slane %v548_v49, 1  ;;  %v550_v54 = vpop.f32.mrb[14].mxu1 }
 0x1d5   :  { %v551_v55 = vpop.f32.mrb[15].mxu1 }
 0x1d6   :  { %v699_v56 = vmin.f32 %v695_v51, 20.0  ;;  %v625_v57 = vsel %vm617_vm3, %v623_v50, %v624_v53  ;;  %v626_v58 = vrot.slane %v551_v55, 1  ;;  %v604_v59 = vpop.f32.mrb[16].mxu0 }
 0x1d7   :  { %v634_v0 = vadd.f32 %v625_v57, %v540_v33  ;;  %v649_v1 = vrot.slane %v604_v59, 2  ;;  %v1691_v4 = vpop.f32.mrb[17].mxu0 }
 0x1d8   :  { %v704_v6 = vmul.f32 1.442695, %v699_v56  ;;  %v627_v7 = vsel %vm617_vm3, %v624_v53, %v626_v58  ;;  %v607_v8 = vpop.f32.mrb[18].mxu0  ;;  %v746_v56 = vcombine.high %v745_v37, %v745_v37 }
 0x1d9   :  { %v635_v9 = vadd.f32 %v627_v7, %v546_v47  ;;  %v650_v10 = vsel %vm642_vm4, %v648_v61, %v649_v1  ;;  %v651_v11 = vrot.slane %v607_v8, 2  ;;  %v1692_v12 = vpop.f32.mrb[19].mxu0  ;;  %v764_v47 = vrot.slane %v753_v40, %v2081_v5 }
 0x1da   :  { %1864 = vpow2.f32 %v704_v6  ;;  %v659_v15 = vadd.f32 %v650_v10, %v634_v0  ;;  %v1849_v12 = vld [vmem:[%s2404_s4 + $0x7c] ss:$12 sps:$4 sm:$0xff]  }
 0x1db   :  { %v652_v17 = vsel %vm642_vm4, %v649_v1, %v651_v11 }
 0x1dc   :  { %v696_v18 = vmul.f32 %v691_v16, %v659_v15  ;;  %v660_v19 = vadd.f32 %v652_v17, %v635_v9  ;;  %v1853_v15 = vld [vmem:[%s2404_s4 + $0x68] ss:$12 sps:$4 sm:$0xff]  }
 0x1dd   :  { %v1852_v17 = vld [vmem:[%s2404_s4 + $0x94] ss:$12 sps:$4 sm:$0xff]  }
 0x1de   :  { %v1863_v20 = vpop.eup %1862  ;;  %v700_v21 = vmin.f32 %v696_v18, 20.0  ;;  %v697_v22 = vmul.f32 %v691_v16, %v660_v19  ;;  %v1847_v16 = vld [vmem:[%s2404_s4 + $0x78] ss:$12 sps:$4 sm:$0xff]  }
 0x1df   :  { %v710_v25 = vadd.f32 2.0, %v1863_v20 }
 0x1e0   :  { %v706_v26 = vmul.f32 1.442695, %v700_v21  ;;  %v701_v27 = vmin.f32 %v697_v22, 20.0  ;;  %v1850_v21 = vld [vmem:[%s2404_s4 + $0x90] ss:$12 sps:$4 sm:$0xff]  }
 0x1e1   :  { %v714_v30 = vmul.f32 %v1863_v20, %v710_v25  ;;  %v1857_v25 = vld [vmem:[%s2404_s4 + $0xac] ss:$12 sps:$4 sm:$0xff]  }
 0x1e2   :  { %1866 = vpow2.f32 %v706_v26  ;;  %v708_v31 = vmul.f32 1.442695, %v701_v27  ;;  %v1858_v26 = vld [vmem:[%s2404_s4 + $0x98] ss:$12 sps:$4 sm:$0xff]   ;;  %v1855_v27 = vld [vmem:[%s2404_s4 + $0xa8] ss:$12 sps:$4 sm:$0xff]  }
 0x1e3   :  { %v722_v32 = vadd.f32 2.0, %v714_v30  ;;  %v718_v43 = vmul.f32 %v714_v30, %v2256_v35  ;;  %v760_v35 = vrot.slane %v746_v56, %v2058_v52 }
 0x1e4   :  { %v1865_v33 = vpop.eup %1864  ;;  %1868 = vpow2.f32 %v708_v31 }
 0x1e5   :  { %1870 = vrcp.f32 %v722_v32  ;;  %v711_v34 = vadd.f32 2.0, %v1865_v33  ;;  %v768_v61 = vrot.slane %v760_v35, %v2081_v5  ;;  %v1859_v32 = vld [vmem:[%s2404_s4 + $0xb0] ss:$12 sps:$4 sm:$0xff]  }
 0x1e7   :  { %v715_v36 = vmul.f32 %v1865_v33, %v711_v34  ;;  %v1187_v34 = vpack.c.bf16 %v2107_v14, %v2102_v13  ;;  %v1189_v13 = vpack.c.bf16 %v2152_v29, %v2147_v28 }
 0x1e9   :  { %v723_v38 = vadd.f32 2.0, %v715_v36  ;;  %v719_v54 = vmul.f32 %v715_v36, %v695_v51  ;;  %v1844_v51 = vld [vmem:[%s2404_s4 + $0x60] ss:$12 sps:$4 sm:$0xff]   ;;  %v1188_v36 = vpack.c.bf16 %v2129_v23, %v2136_v24 }
 0x1eb   :  { %1872 = vrcp.f32 %v723_v38 }
 0x1ec   :  { %v1867_v39 = vpop.eup %1866 }
 0x1ed   :  { %v712_v41 = vadd.f32 2.0, %v1867_v39 }
 0x1ee   :  { %v1869_v42 = vpop.eup %1868 }
 0x1ef   :  { %v1871_v44 = vpop.eup %1870  ;;  %v716_v45 = vmul.f32 %v1867_v39, %v712_v41  ;;  %v713_v46 = vadd.f32 2.0, %v1869_v42 }
 0x1f0   :  { %v730_v48 = vmul.f32 %v1871_v44, %v718_v43 }
 0x1f1   :  { %v724_v49 = vadd.f32 2.0, %v716_v45  ;;  %v717_v50 = vmul.f32 %v1869_v42, %v713_v46  ;;  %v720_v59 = vmul.f32 %v716_v45, %v696_v18  ;;  %v1854_v18 = vld [vmem:[%s2404_s4 + $0x80] ss:$12 sps:$4 sm:$0xff]  }
 0x1f2   :  { %v771_v53 = vmul.f32 %v764_v47, %v730_v48 }
 0x1f3   :  { %1874 = vrcp.f32 %v724_v49  ;;  %v725_v62 = vadd.f32 2.0, %v717_v50  ;;  %v721_v1 = vmul.f32 %v717_v50, %v697_v22 }
 0x1f4   :  { %775 = vst [vmem:[#allocation2 + $0x1] sm:$0xff] %v771_v53 }
 0x1f5   :  { %v1873_v55 = vpop.eup %1872  ;;  %1876 = vrcp.f32 %v725_v62 }
 0x1f6   :  { %v731_v57 = vmul.f32 %v1873_v55, %v719_v54 }
 0x1f8   :  { %v772_v58 = vmul.f32 %v764_v47, %v731_v57 }
 0x1fa   :  { %776 = vst [vmem:[#allocation2 + $0x9] sm:$0xff] %v772_v58 }
 0x1fb   :  { %v779_v8 = vld [vmem:[#allocation2] sm:$0xff] }
 0x1fd   :  { %v1875_v60 = vpop.eup %1874 }
 0x1fe   :  { %v732_v0 = vmul.f32 %v1875_v60, %v720_v59 }
 0x1ff   :  { %v1877_v4 = vpop.eup %1876 }
 0x200   :  { %v773_v6 = vmul.f32 %v768_v61, %v732_v0  ;;  %v733_v7 = vmul.f32 %v1877_v4, %v721_v1 }
 0x201   :  { %v780_v9 = vld [vmem:[#allocation2 + $0x8] sm:$0xff]  ;;  %v781_v19 = vld [vmem:[#allocation2 + $0x10] sm:$0xff] }
 0x202   :  { %777 = vst [vmem:[#allocation2 + $0x19] sm:$0xff] %v773_v6  ;;  %v774_v10 = vmul.f32 %v768_v61, %v733_v7  ;;  %v785_v11 = vpack.c.bf16 %v780_v9, %v779_v8 }
 0x204   :  { %778 = vst [vmem:[#allocation2 + $0x21] sm:$0xff] %v774_v10  ;;  %981 = vmatmul.mubr.bf16.vlgmr.msra.gmra.mrb[16].mxu1 %v785_v11  ;;  %1710 = vmatmul.mubr.bf16.vlgmr.msra.gmra.mrb[20].mxu0 %v785_v11 }
 0x205   :  { %1281 = vmatpush1.bf16.msra.mxu1 %v1844_v51  ;;  %990 = vmatprep.mubr.bf16.mxu1 %v1900_v2 }
 0x206   :  { %1282 = vmatprep.subr.bf16.mxu1 %v1849_v12  ;;  %1713 = vmatprep.mubr.msk.bf16.mxu0 %vm1897_vm0, %v1898_v3 }
 0x207   :  { %1722 = vmatpush3.bf16.msra.mxu0 %v1853_v15 }
 0x208   :  { %1723 = vmatprep.subr.bf16.mxu0 %v1898_v3 }
 0x209   :  { %1283 = vmatpush1.bf16.msra.mxu1 %v1847_v16  ;;  %v782_v20 = vld [vmem:[#allocation2 + $0x18] sm:$0xff] }
 0x20a   :  { %v786_v22 = vpack.c.bf16 %v782_v20, %v781_v19  ;;  %1284 = vmatprep.subr.bf16.mxu1 %v1852_v17 }
 0x20b   :  { %1724 = vmatpush3.bf16.msra.mxu0 %v1854_v18  ;;  %v783_v30 = vld [vmem:[#allocation2 + $0x20] sm:$0xff]  ;;  %v784_v31 = vld [vmem:[#allocation2 + $0x28] sm:$0xff] }
 0x20c   :  { %991 = vmatmul.mubr.bf16.gmra.mrb[20].mxu1 %v786_v22  ;;  %1714 = vmatmul.mubr.bf16.gmra.mrb[24].mxu0 %v786_v22  ;;  %v787_v33 = vpack.c.bf16 %v784_v31, %v783_v30 }
 0x20d   :  { %1285 = vmatpush1.bf16.msra.mxu1 %v1850_v21  ;;  %999 = vmatprep.mubr.bf16.mxu1 %v1900_v2 }
 0x20e   :  { %1717 = vmatprep.mubr.msk.bf16.mxu0 %vm1897_vm0, %v1898_v3  ;;  %1286 = vmatprep.subr.bf16.mxu1 %v1857_v25 }
 0x20f   :  { %1725 = vmatprep.subr.bf16.mxu0 %v1898_v3 }
 0x210   :  { %1726 = vmatpush3.bf16.msra.mxu0 %v1858_v26 }
 0x211   :  { %1287 = vmatpush1.bf16.msra.mxu1 %v1855_v27  ;;  %1727 = vmatprep.subr.bf16.mxu0 %v1898_v3 }
 0x212   :  { %1783 = vmatprep.subr.bf16.mxu1 %v1898_v3 }
 0x214   :  { %1000 = vmatmul.mubr.bf16.gmra.mrb[24].mxu1 %v787_v33  ;;  %1718 = vmatmul.mubr.bf16.gmra.mrb[28].mxu0 %v787_v33 }
 0x215   :  { %1312 = vmatprep.mubr.bf16.mxu1 %v1900_v2  ;;  %1728 = vmatpush3.bf16.msra.mxu0 %v1859_v32 }
 0x216   :  { %1729 = vmatprep.mubr.msk.bf16.mxu0 %vm1897_vm0, %v1898_v3 }
 0x21c   :  { %1541 = vmatmul.mubr.msk.bf16.vlgmr.msra.gmra.mrb[28].mxu1 %vm115_vm2, %v1187_v34  ;;  %1730 = vmatmul.mubr.msk.bf16.vlgmr.msra.gmra.mrb[32].mxu0 %vm115_vm2, %v1187_v34 }
 0x21d   :  { %1787 = vmatpush3.bf16.msra.mxu1 %v1853_v15  ;;  %1322 = vmatprep.mubr.bf16.mxu1 %v1900_v2 }
 0x21e   :  { %1784 = vmatprep.subr.bf16.mxu1 %v1898_v3 }
 0x221   :  { %1788 = vmatpush3.bf16.msra.mxu1 %v1854_v18 }
 0x222   :  { %1785 = vmatprep.subr.bf16.mxu1 %v1898_v3 }
 0x224   :  { %1542 = vmatmul.mubr.msk.bf16.gmra.mrb[32].mxu1 %vm115_vm2, %v1188_v36 }
 0x225   :  { %1789 = vmatpush3.bf16.msra.mxu1 %v1858_v26  ;;  %1331 = vmatprep.mubr.bf16.mxu1 %v1900_v2  ;;  %v351_v2 = vadd.f32 1e-08, %v2249_v63 }
 0x226   :  { %1786 = vmatprep.subr.bf16.mxu1 %v1898_v3 }
 0x227   :  { %1878 = vrsqrt.f32 %v351_v2 }
 0x229   :  { %1790 = vmatpush3.bf16.msra.mxu1 %v1859_v32 }
 0x22c   :  { %1543 = vmatmul.mubr.msk.bf16.gmra.mrb[36].mxu1 %vm115_vm2, %v1189_v13 }
 0x22d   :  { %1733 = vmatprep.mubr.msk.bf16.mxu1 %vm1897_vm0, %v1898_v3 }
 0x231   :  { %v1879_v14 = vpop.eup %1878 }
 0x232   :  { %v1121_v28 = vrot.slane %v1879_v14, %v2058_v52 }
 0x234   :  { %1734 = vmatmul.mubr.msk.bf16.vlgmr.msra.gmra.mrb[40].mxu1 %vm115_vm2, %v1188_v36  ;;  %v1129_v63 = vrot.slane %v1121_v28, %v2058_v52  ;;  %v1122_v6 = vcombine.high %v1121_v28, %v1121_v28 }
 0x235   :  { %1737 = vmatprep.mubr.msk.bf16.mxu1 %vm1897_vm0, %v1898_v3 }
 0x236   :  { %v1140_v53 = vrot.slane %v1129_v63, %v2081_v5  ;;  %v1136_v25 = vrot.slane %v1122_v6, %v2058_v52 }
 0x238   :  { %v1144_v14 = vrot.slane %v1136_v25, %v2081_v5 }
 0x23c   :  { %1738 = vmatmul.mubr.msk.bf16.gmra.mrb[44].mxu1 %vm115_vm2, %v1189_v13 }
 0x2d7   :  { %v982_v23 = vpop.f32.mrb[16].mxu1  ;;  %v1043_v24 = vpop.f32.mrb[20].mxu0 }
 0x2d8   :  { %v984_v29 = vpop.f32.mrb[17].mxu1  ;;  %v1711_v37 = vpop.f32.mrb[21].mxu0  ;;  %v1096_v40 = vrot.slane %v1043_v24, 2 }
 0x2d9   :  { %v986_v38 = vpop.f32.mrb[18].mxu1  ;;  %v1046_v39 = vpop.f32.mrb[22].mxu0  ;;  %v1072_v44 = vrot.slane %v984_v29, 1 }
 0x2da   :  { %v1097_v41 = vrot.slane %v1046_v39, 2  ;;  %v988_v42 = vpop.f32.mrb[19].mxu1  ;;  %v1712_v43 = vpop.f32.mrb[23].mxu0 }
 0x2db   :  { %v1073_v3 = vrot.slane %v988_v42, 1 }
 0x2dc   :  { %v1098_v45 = vsel %vm642_vm4, %v1096_v40, %v1097_v41 }
 0x2dd   :  { %v1074_v46 = vsel %vm617_vm3, %v1072_v44, %v1073_v3 }
 0x2de   :  { %v1086_v47 = vadd.f32 %v1074_v46, %v982_v23 }
 0x2df   :  { %v992_v48 = vpop.f32.mrb[20].mxu1  ;;  %v1051_v49 = vpop.f32.mrb[24].mxu0 }
 0x2e0   :  { %v1110_v50 = vadd.f32 %v1098_v45, %v1086_v47  ;;  %v1099_v62 = vrot.slane %v1051_v49, 2  ;;  %v993_v54 = vpop.f32.mrb[21].mxu1  ;;  %v1715_v55 = vpop.f32.mrb[25].mxu0 }
 0x2e1   :  { %v1075_v56 = vrot.slane %v993_v54, 1  ;;  %v995_v57 = vpop.f32.mrb[22].mxu1  ;;  %v1054_v58 = vpop.f32.mrb[26].mxu0 }
 0x2e2   :  { %v2347_v35 = vmul.f32 %v1140_v53, %v1110_v50  ;;  %v1100_v59 = vsel %vm642_vm4, %v1097_v41, %v1099_v62  ;;  %v997_v60 = vpop.f32.mrb[23].mxu1  ;;  %v1716_v61 = vpop.f32.mrb[27].mxu0  ;;  %v1101_v11 = vrot.slane %v1054_v58, 2 }
 0x2e3   :  { %v1076_v0 = vsel %vm617_vm3, %v1073_v3, %v1075_v56  ;;  %v1077_v17 = vrot.slane %v997_v60, 1 }
 0x2e4   :  { %v1151_v1 = vmin.f32 %v2347_v35, 20.0  ;;  %v1087_v4 = vadd.f32 %v1076_v0, %v986_v38 }
 0x2e6   :  { %v1155_v7 = vmul.f32 1.442695, %v1151_v1  ;;  %v1111_v8 = vadd.f32 %v1100_v59, %v1087_v4 }
 0x2e7   :  { %v1001_v9 = vpop.f32.mrb[24].mxu1  ;;  %v1059_v51 = vpop.f32.mrb[28].mxu0 }
 0x2e8   :  { %1880 = vpow2.f32 %v1155_v7  ;;  %v2352_v10 = vmul.f32 %v1140_v53, %v1111_v8  ;;  %v1102_v12 = vrot.slane %v1059_v51, 2  ;;  %v1003_v15 = vpop.f32.mrb[25].mxu1  ;;  %v1719_v16 = vpop.f32.mrb[29].mxu0 }
 0x2e9   :  { %v1078_v18 = vrot.slane %v1003_v15, 1  ;;  %v1005_v19 = vpop.f32.mrb[26].mxu1  ;;  %v1062_v20 = vpop.f32.mrb[30].mxu0 }
 0x2ea   :  { %v1152_v21 = vmin.f32 %v2352_v10, 20.0  ;;  %v1103_v22 = vsel %vm642_vm4, %v1101_v11, %v1102_v12  ;;  %v1104_v26 = vrot.slane %v1062_v20, 2  ;;  %v1006_v27 = vpop.f32.mrb[27].mxu1  ;;  %v1720_v30 = vpop.f32.mrb[31].mxu0 }
 0x2eb   :  { %v1079_v31 = vsel %vm617_vm3, %v1077_v17, %v1078_v18  ;;  %v1080_v32 = vrot.slane %v1006_v27, 1 }
 0x2ec   :  { %v1157_v33 = vmul.f32 1.442695, %v1152_v21  ;;  %v1088_v34 = vadd.f32 %v1079_v31, %v995_v57  ;;  %v1105_v36 = vsel %vm642_vm4, %v1102_v12, %v1104_v26 }
 0x2ed   :  { %v1081_v13 = vsel %vm617_vm3, %v1078_v18, %v1080_v32 }
 0x2ee   :  { %1882 = vpow2.f32 %v1157_v33  ;;  %v1112_v2 = vadd.f32 %v1103_v22, %v1088_v34  ;;  %v1089_v23 = vadd.f32 %v1081_v13, %v1001_v9  ;;  %v1547_v33 = vld [vmem:[%s2402_s2 + $0x11] ss:$0 sm:$0xff] }
 0x2ef   :  { %v1314_v24 = vpop.f32.mrb[28].mxu1  ;;  %v1375_v28 = vpop.f32.mrb[32].mxu0 }
 0x2f0   :  { %v2361_v52 = vmul.f32 %v1144_v14, %v1112_v2  ;;  %v1113_v29 = vadd.f32 %v1105_v36, %v1089_v23  ;;  %v1316_v37 = vpop.f32.mrb[29].mxu1  ;;  %v1428_v38 = vrot.slane %v1375_v28, 2  ;;  %v1731_v39 = vpop.f32.mrb[33].mxu0 }
 0x2f1   :  { %v1318_v40 = vpop.f32.mrb[30].mxu1  ;;  %v2363_v41 = vpop.f32.mrb[34].mxu0  ;;  %v1404_v63 = vrot.slane %v1316_v37, 1 }
 0x2f2   :  { %v1881_v42 = vpop.eup %1880  ;;  %v1153_v43 = vmin.f32 %v2361_v52, 20.0  ;;  %v2366_v44 = vmul.f32 %v1144_v14, %v1113_v29  ;;  %v1320_v3 = vpop.f32.mrb[31].mxu1  ;;  %v1429_v5 = vrot.slane %v2363_v41, 2 }
 0x2f3   :  { %v1732_v45 = vpop.f32.mrb[35].mxu0  ;;  %v1405_v46 = vrot.slane %v1320_v3, 1  ;;  %v1163_v47 = vadd.f32 2.0, %v1881_v42 }
 0x2f4   :  { %v1159_v48 = vmul.f32 1.442695, %v1153_v43  ;;  %v1154_v49 = vmin.f32 %v2366_v44, 20.0  ;;  %v1430_v50 = vsel %vm642_vm4, %v1428_v38, %v1429_v5 }
 0x2f5   :  { %v1406_v53 = vsel %vm617_vm3, %v1404_v63, %v1405_v46  ;;  %v1167_v62 = vmul.f32 %v1881_v42, %v1163_v47 }
 0x2f6   :  { %1884 = vpow2.f32 %v1159_v48  ;;  %v1161_v54 = vmul.f32 1.442695, %v1154_v49  ;;  %v1418_v55 = vadd.f32 %v1406_v53, %v1314_v24 }
 0x2f7   :  { %v1175_v56 = vadd.f32 2.0, %v1167_v62  ;;  %v1324_v57 = vpop.f32.mrb[32].mxu1  ;;  %v1171_v20 = vmul.f32 %v1167_v62, %v2347_v35 }
 0x2f8   :  { %v1883_v58 = vpop.eup %1882  ;;  %1886 = vpow2.f32 %v1161_v54  ;;  %v1442_v59 = vadd.f32 %v1430_v50, %v1418_v55  ;;  %v1325_v60 = vpop.f32.mrb[33].mxu1 }
 0x2f9   :  { %1888 = vrcp.f32 %v1175_v56  ;;  %v1407_v61 = vrot.slane %v1325_v60, 1  ;;  %v1327_v0 = vpop.f32.mrb[34].mxu1  ;;  %v1164_v1 = vadd.f32 2.0, %v1883_v58 }
 0x2fa   :  { %v1329_v4 = vpop.f32.mrb[35].mxu1 }
 0x2fb   :  { %v1408_v6 = vsel %vm617_vm3, %v1405_v46, %v1407_v61  ;;  %v1168_v7 = vmul.f32 %v1883_v58, %v1164_v1  ;;  %v1409_v15 = vrot.slane %v1329_v4, 1 }
 0x2fc   :  { %v1419_v8 = vadd.f32 %v1408_v6, %v1318_v40 }
 0x2fd   :  { %v1176_v9 = vadd.f32 2.0, %v1168_v7  ;;  %v1172_v28 = vmul.f32 %v1168_v7, %v2352_v10 }
 0x2ff   :  { %v1333_v51 = vpop.f32.mrb[36].mxu1  ;;  %1890 = vrcp.f32 %v1176_v9 }
 0x300   :  { %v1885_v11 = vpop.eup %1884  ;;  %v1335_v12 = vpop.f32.mrb[37].mxu1 }
 0x301   :  { %v1410_v16 = vrot.slane %v1335_v12, 1  ;;  %v1337_v17 = vpop.f32.mrb[38].mxu1  ;;  %v1165_v18 = vadd.f32 2.0, %v1885_v11 }
 0x302   :  { %v1887_v19 = vpop.eup %1886  ;;  %v1338_v21 = vpop.f32.mrb[39].mxu1 }
 0x303   :  { %v1889_v22 = vpop.eup %1888  ;;  %v1411_v25 = vsel %vm617_vm3, %v1409_v15, %v1410_v16  ;;  %v1412_v26 = vrot.slane %v1338_v21, 1  ;;  %v1169_v27 = vmul.f32 %v1885_v11, %v1165_v18  ;;  %v1166_v30 = vadd.f32 2.0, %v1887_v19 }
 0x304   :  { %v1183_v31 = vmul.f32 %v1889_v22, %v1171_v20  ;;  %v1420_v32 = vadd.f32 %v1411_v25, %v1327_v0 }
 0x305   :  { %v1413_v34 = vsel %vm617_vm3, %v1410_v16, %v1412_v26  ;;  %v1177_v36 = vadd.f32 2.0, %v1169_v27  ;;  %v1170_v13 = vmul.f32 %v1887_v19, %v1166_v30  ;;  %v1173_v47 = vmul.f32 %v1169_v27, %v2361_v52 }
 0x306   :  { %v1446_v2 = vadd.f32 %v1442_v59, %v1183_v31  ;;  %v1421_v14 = vadd.f32 %v1413_v34, %v1333_v51 }
 0x307   :  { %v1383_v35 = vpop.f32.mrb[40].mxu1  ;;  %1892 = vrcp.f32 %v1177_v36  ;;  %v1178_v23 = vadd.f32 2.0, %v1170_v13 }
 0x308   :  { %v1454_v24 = vadd.f32 %v1547_v33, %v1446_v2  ;;  %v1431_v29 = vrot.slane %v1383_v35, 2  ;;  %v1735_v37 = vpop.f32.mrb[41].mxu1 }
 0x309   :  { %v1891_v38 = vpop.eup %1890  ;;  %v1386_v39 = vpop.f32.mrb[42].mxu1  ;;  %1894 = vrcp.f32 %v1178_v23 }
 0x30a   :  { %1458 = vst [vmem:[%s2407_s6] sm:$0xff] %v1454_v24  ;;  %v1184_v40 = vmul.f32 %v1891_v38, %v1172_v28  ;;  %v1432_v42 = vsel %vm642_vm4, %v1429_v5, %v1431_v29  ;;  %v1736_v43 = vpop.f32.mrb[43].mxu1  ;;  %v1433_v10 = vrot.slane %v1386_v39, 2  ;;  %v1174_v5 = vmul.f32 %v1170_v13, %v2366_v44 }
 0x30b   :  { %v1443_v3 = vadd.f32 %v1432_v42, %v1419_v8 }
 0x30d   :  { %v1447_v45 = vadd.f32 %v1443_v3, %v1184_v40 }
 0x30f   :  { %v1455_v63 = vadd.f32 %v1547_v33, %v1447_v45  ;;  %v1391_v46 = vpop.f32.mrb[44].mxu1 }
 0x310   :  { %v1434_v48 = vrot.slane %v1391_v46, 2  ;;  %v1739_v49 = vpop.f32.mrb[45].mxu1 }
 0x311   :  { %v1893_v50 = vpop.eup %1892  ;;  %1459 = vst [vmem:[%s2407_s6 + $0x8] sm:$0xff] %v1455_v63  ;;  %v1394_v53 = vpop.f32.mrb[46].mxu1 }
 0x312   :  { %v1185_v62 = vmul.f32 %v1893_v50, %v1173_v47  ;;  %v1435_v41 = vsel %vm642_vm4, %v1433_v10, %v1434_v48  ;;  %v1436_v54 = vrot.slane %v1394_v53, 2  ;;  %v1740_v55 = vpop.f32.mrb[47].mxu1 }
 0x313   :  { %v1895_v56 = vpop.eup %1894  ;;  %v1444_v57 = vadd.f32 %v1435_v41, %v1420_v32 }
 0x314   :  { %v1186_v58 = vmul.f32 %v1895_v56, %v1174_v5  ;;  %v1437_v52 = vsel %vm642_vm4, %v1434_v48, %v1436_v54 }
 0x315   :  { %v1448_v59 = vadd.f32 %v1444_v57, %v1185_v62  ;;  %v1445_v60 = vadd.f32 %v1437_v52, %v1421_v14 }
 0x317   :  { %v1456_v61 = vadd.f32 %v1547_v33, %v1448_v59  ;;  %v1449_v0 = vadd.f32 %v1445_v60, %v1186_v58 }
 0x319   :  { %1460 = vst [vmem:[%s2407_s6 + $0x10] sm:$0xff] %v1456_v61  ;;  %v1457_v1 = vadd.f32 %v1547_v33, %v1449_v0 }
 0x31b   :  { %1461 = vst [vmem:[%s2407_s6 + $0x18] sm:$0xff] %v1457_v1 }

</bundles_post_ra>
